<compile_context>
chip_gen: v6e
topology: v6e:2x2x1
jax: 0.10.0
libtpu: 0.0.40
codegen_flags: <defaults>
</compile_context>

<pallas_src>
import functools

import jax
import jax.numpy as jnp
import numpy as np
from jax.experimental import pallas as pl
from jax.experimental.pallas import tpu as pltpu


def _time_mixer_kernel(
    h_ref, xs_ref, kvs_ref,
    lnw_ref, lnb_ref,
    wx_ref, ws_ref, wo_ref,
    urow_ref, w2d_ref, gnw_ref, gnb_ref,
    selk_ref, hmask_ref, hmmean_ref,
    hout_ref, xsout_ref, kvsout_ref,
    att_sc, rsp_sc, kv_sc,
    *, T, H, K):
  C = H * K
  f32 = jnp.float32
  bf16 = jnp.bfloat16
  HIGH = jax.lax.Precision.HIGHEST

  h_in = h_ref[0].astype(f32)                                # (T, C)

  # ---- pre-LayerNorm (eps = 1e-5, biased variance, affine) ----
  mean = jnp.mean(h_in, axis=-1, keepdims=True)
  var = jnp.mean((h_in - mean) ** 2, axis=-1, keepdims=True)
  x = (h_in - mean) * jax.lax.rsqrt(var + 1e-5)
  x = x * lnw_ref[...] + lnb_ref[...]                        # (T, C)

  # x_state_out = x[:, -1] (post-LayerNorm row).
  xsout_ref[0] = x[T - 1:T, :].astype(xsout_ref.dtype)

  # ---- token shift (one step into the past): pure data movement ----
  # att_sc is reused as a temporary for the shifted activations; it is
  # overwritten with the attention "bonus" term further down (the shifted
  # value is consumed by the projection matmul before that store).
  att_sc[pl.ds(1, T - 1), :] = x[:T - 1, :]
  att_sc[pl.ds(0, 1), :] = xs_ref[0].astype(f32)
  shifted = att_sc[...]                                      # (T, C)

  # ---- fused projections (token-shift lerps folded into the weights) ----
  # bf16 operands on the MXU, f32 accumulation.
  proj = (jnp.dot(x.astype(bf16), wx_ref[...], preferred_element_type=f32)
          + jnp.dot(shifted.astype(bf16), ws_ref[...],
                    preferred_element_type=f32))             # (T, 4C)
  r2d = proj[:, 0 * C:1 * C]                                 # (T, C) each
  k2d = proj[:, 1 * C:2 * C]
  v2d = proj[:, 2 * C:3 * C]
  g2d = proj[:, 3 * C:4 * C]

  # ---- head "spread", hoisted out of the recurrence and batched over T ----
  # spread(z)[t, i, h*K + j] = z[t, h*K + i], built with constant 0/1
  # selector matmuls (kept f32 / HIGHEST so the recurrence state is exact).
  selk = selk_ref[...]                                       # (K, C)
  hmask = hmask_ref[...]                                     # (C, C)

  def spread(z2d):                                           # (T,C)->(T,K,C)
    tmp = selk[None, :, :] * z2d[:, None, :]                 # (T, K, C)
    sp = jnp.dot(tmp.reshape(T * K, C), hmask,
                 preferred_element_type=f32, precision=HIGH)
    return sp.reshape(T, K, C)

  rsp_sc[...] = spread(r2d)                                  # receptance
  kv_sc[...] = spread(k2d) * v2d[:, None, :]                 # per-head k v^T

  # Bonus (u) contribution, state independent:
  #   out_bonus[t, m] = v[t, m] * sum_{i in head(m)} r[t, i] k[t, i] u[i]
  rku = (r2d * k2d * urow_ref[...]).astype(bf16)
  att_sc[...] = v2d * jnp.dot(rku, hmask.astype(bf16),
                              preferred_element_type=f32)    # (T, C)

  # ---- WKV recurrence: only the state-dependent work stays serial ----
  w2d = w2d_ref[...]                                         # (K, C) decay
  s0 = kvs_ref[0].astype(f32)                                # (K, C)

  def body(t, s):
    att_sc[pl.ds(t, 1), :] += jnp.sum(rsp_sc[t] * s, axis=0, keepdims=True)
    return s * w2d + kv_sc[t]

  s_fin = jax.lax.fori_loop(0, T, body, s0, unroll=min(T, 8))
  kvsout_ref[0] = s_fin.astype(kvsout_ref.dtype)

  att = att_sc[...]                                          # (T, C)

  # ---- GroupNorm (one group per head, eps = 0.00064), one vector pass ----
  hm_mean = hmmean_ref[...]                                  # (C, C) bf16 1/K
  gmu = jnp.dot(att.astype(bf16), hm_mean, preferred_element_type=f32)
  cen = att - gmu
  gvar = jnp.dot((cen * cen).astype(bf16), hm_mean, preferred_element_type=f32)
  att = cen * jax.lax.rsqrt(gvar + 0.00064) * gnw_ref[...] + gnb_ref[...]

  # ---- SiLU gate, output projection, residual ----
  gate = g2d * jax.nn.sigmoid(g2d)                           # f32 VPU/EUP
  out = jnp.dot((att * gate).astype(bf16), wo_ref[...],
                preferred_element_type=f32)                  # (T, C)
  hout_ref[0] = (h_in + out).astype(hout_ref.dtype)


def _spread_constants(H, K):
  C = H * K
  lane = np.arange(C)
  selk = ((lane[None, :] % K) == np.arange(K)[:, None]).astype(np.float32)
  hmask = ((lane[:, None] // K) == (lane[None, :] // K)).astype(np.float32)
  return (jnp.asarray(selk), jnp.asarray(hmask),
          jnp.asarray(hmask / K, dtype=jnp.bfloat16))


@jax.jit
def time_mixer_forward(hidden_in, x_state, kv_state, params):
  B, T, C = hidden_in.shape
  H, K = params["bonus"].shape
  assert C == H * K
  f32 = jnp.float32
  bf16 = jnp.bfloat16

  # Per-head decay spread to the lane-stacked (K, C) layout on the host.
  decay_w = jnp.exp(-jnp.exp(params["decay"].astype(f32)))            # (H, K)
  w2d = jnp.repeat(decay_w.T, K, axis=1)                              # (K, C)
  u_row = params["bonus"].astype(f32).reshape(1, C)                   # (1, C)

  # Fold the token-shift lerps into the projection weights (bf16 MXU copies):
  #   lerp(shifted, x, mu) @ W == x @ (mu * W) + shifted @ ((1 - mu) * W)
  def fold(mu, w):
    return mu[:, None].astype(f32) * w.astype(f32)
  wx = jnp.concatenate([fold(params["mu_r"], params["w_r"]),
                        fold(params["mu_k"], params["w_k"]),
                        fold(params["mu_v"], params["w_v"]),
                        fold(params["mu_g"], params["w_g"])],
                       axis=1).astype(bf16)                           # (C, 4C)
  ws = jnp.concatenate([fold(1.0 - params["mu_r"], params["w_r"]),
                        fold(1.0 - params["mu_k"], params["w_k"]),
                        fold(1.0 - params["mu_v"], params["w_v"]),
                        fold(1.0 - params["mu_g"], params["w_g"])],
                       axis=1).astype(bf16)
  wo = params["w_o"].astype(bf16)

  selk, hmask, hm_mean = _spread_constants(H, K)

  # kv_state: (B, H, K, K) -> lane-stacked (B, K, C) with [b, i, h*K + j].
  kv_lane = kv_state.astype(f32).transpose(0, 2, 1, 3).reshape(B, K, C)

  args = (
      hidden_in,
      x_state.reshape(B, 1, C),
      kv_lane,
      params["ln_w"].reshape(1, C).astype(f32),
      params["ln_b"].reshape(1, C).astype(f32),
      wx, ws, wo,
      u_row, w2d,
      params["gn_w"].reshape(1, C).astype(f32),
      params["gn_b"].reshape(1, C).astype(f32),
      selk, hmask, hm_mean,
  )

  def inv(shape):  # grid-invariant (weights / constants): fetched once
    return pl.BlockSpec(shape, lambda b: (0,) * len(shape))

  in_specs = [
      pl.BlockSpec((1, T, C), lambda b: (b, 0, 0)),          # hidden_in
      pl.BlockSpec((1, 1, C), lambda b: (b, 0, 0)),          # x_state
      pl.BlockSpec((1, K, C), lambda b: (b, 0, 0)),          # kv_state (lane)
      inv((1, C)), inv((1, C)),                              # ln_w, ln_b
      inv((C, 4 * C)), inv((C, 4 * C)), inv((C, C)),         # wx, ws, w_o
      inv((1, C)), inv((K, C)),                              # u_row, w2d
      inv((1, C)), inv((1, C)),                              # gn_w, gn_b
      inv((K, C)), inv((C, C)), inv((C, C)),                 # selk, hmask, 1/K
  ]
  out_specs = (
      pl.BlockSpec((1, T, C), lambda b: (b, 0, 0)),
      pl.BlockSpec((1, 1, C), lambda b: (b, 0, 0)),
      pl.BlockSpec((1, K, C), lambda b: (b, 0, 0)),
  )
  out_shape = (
      jax.ShapeDtypeStruct((B, T, C), hidden_in.dtype),
      jax.ShapeDtypeStruct((B, 1, C), hidden_in.dtype),
      jax.ShapeDtypeStruct((B, K, C), jnp.float32),
  )

  flops = int(B * (2 * T * C * 4 * C * 2        # fused projections
                   + 2 * T * K * C * C * 2      # r/k spread matmuls
                   + 2 * T * C * C * 2          # bonus + output projection
                   + 2 * T * C * C * 2          # groupnorm mean/var matmuls
                   + 12 * T * K * C))           # recurrence elementwise
  bytes_accessed = int(
      2 * B * T * C * 4 + 4 * B * C * 4 + 4 * B * K * C * 4
      + (2 * C * 4 * C + C * C) * 2 + 2 * C * C * 4 + C * C * 2
      + (3 * K * C + 8 * C) * 4)
  cost = pl.CostEstimate(flops=flops, transcendentals=int(B * T * C),
                         bytes_accessed=bytes_accessed)

  kernel = functools.partial(_time_mixer_kernel, T=T, H=H, K=K)
  h_out, xs_out, kvs_lane = pl.pallas_call(
      kernel,
      grid=(B,),
      in_specs=in_specs,
      out_specs=out_specs,
      out_shape=out_shape,
      scratch_shapes=[
          pltpu.VMEM((T, C), jnp.float32),      # shifted temp / attention acc
          pltpu.VMEM((T, K, C), jnp.float32),   # spread receptance
          pltpu.VMEM((T, K, C), jnp.float32),   # per-head outer products k v^T
      ],
      input_output_aliases={2: 2},              # kv_state in -> kv_state out
      cost_estimate=cost,
      compiler_params=pltpu.CompilerParams(
          dimension_semantics=("parallel",),
          # Tiny for the demo; raise (and single-buffer the invariants) once
          # C reaches realistic widths, especially on v7x (64 MiB VMEM).
          vmem_limit_bytes=32 * 1024 * 1024),
  )(*args)

  # Back to the module's (B, H, K, K) state layout.
  kvs_out = kvs_lane.reshape(B, K, H, K).transpose(0, 2, 1, 3)
  return h_out, xs_out.reshape(B, C), kvs_out


def time_mixer_reference(hidden_in, x_state, kv_state, params):
  """Pure-JAX reference mirroring the PyTorch forward."""
  B, T, C = hidden_in.shape
  H, K = params["bonus"].shape
  dot = functools.partial(jnp.matmul, precision=jax.lax.Precision.HIGHEST)

  hp = hidden_in.astype(jnp.float32)
  mean = hp.mean(-1, keepdims=True)
  var = ((hp - mean) ** 2).mean(-1, keepdims=True)
  x = (hp - mean) / jnp.sqrt(var + 1e-5) * params["ln_w"] + params["ln_b"]
  x_state_out = x[:, -1]
  shifted = jnp.concatenate(
      [x_state[:, None, :].astype(jnp.float32), x[:, :-1]], axis=1)

  def lerp(mu):
    return shifted + mu * (x - shifted)

  r = dot(lerp(params["mu_r"]), params["w_r"]).reshape(B, T, H, K)
  k = dot(lerp(params["mu_k"]), params["w_k"]).reshape(B, T, H, K)
  v = dot(lerp(params["mu_v"]), params["w_v"]).reshape(B, T, H, K)
  g = dot(lerp(params["mu_g"]), params["w_g"])

  u = params["bonus"].astype(jnp.float32)
  w = jnp.exp(-jnp.exp(params["decay"].astype(jnp.float32)))
  kvs = kv_state.astype(jnp.float32)
  outs = []
  for t in range(T):
    kv = k[:, t, :, :, None] * v[:, t, :, None, :]
    y = kvs + kv * u[None, :, :, None]
    outs.append(jnp.einsum("bhk,bhkv->bhv", r[:, t], y,
                           precision=jax.lax.Precision.HIGHEST))
    kvs = kvs * w[None, :, :, None] + kv
  att = jnp.stack(outs, axis=1)                              # (B, T, H, K)
  gm = att.mean(-1, keepdims=True)
  gv = ((att - gm) ** 2).mean(-1, keepdims=True)
  att = (att - gm) / jnp.sqrt(gv + 0.00064)
  att = att.reshape(B, T, C) * params["gn_w"] + params["gn_b"]
  out = att * (g * jax.nn.sigmoid(g))
  out = dot(out, params["w_o"])
  return hp + out, x_state_out, kvs


if __name__ == "__main__":
  # Small Config: d_model=32, n_heads=4 -> d_head=8; batch=2, seq=8.
  B, T, C, H = 2, 8, 32, 4
  K = C // H

  key = jax.random.PRNGKey(0)
  ks = jax.random.split(key, 12)
  scale = 0.02
  params = {
      "ln_w": jnp.ones((C,), jnp.float32),
      "ln_b": jnp.zeros((C,), jnp.float32),
      # tokenshift params (torch.empty in the module) -> deterministic uniform
      "mu_r": jax.random.uniform(ks[0], (C,), jnp.float32),
      "mu_k": jax.random.uniform(ks[1], (C,), jnp.float32),
      "mu_v": jax.random.uniform(ks[2], (C,), jnp.float32),
      "mu_g": jax.random.uniform(ks[3], (C,), jnp.float32),
      # nn.Linear weights stored pre-transposed as (in, out): y = x @ W
      "w_r": jax.random.normal(ks[4], (C, C), jnp.float32) * scale,
      "w_k": jax.random.normal(ks[5], (C, C), jnp.float32) * scale,
      "w_v": jax.random.normal(ks[6], (C, C), jnp.float32) * scale,
      "w_g": jax.random.normal(ks[7], (C, C), jnp.float32) * scale,
      "w_o": jax.random.normal(ks[8], (C, C), jnp.float32) * scale,
      "bonus": jnp.ones((H, K), jnp.float32),   # torch.ones init
      "decay": jnp.ones((H, K), jnp.float32),   # torch.ones init
      "gn_w": jnp.ones((C,), jnp.float32),
      "gn_b": jnp.zeros((C,), jnp.float32),
  }

  hidden_in = jax.random.normal(ks[9], (B, T, C), jnp.float32)
  x_state = jax.random.normal(ks[10], (B, C), jnp.float32)
  kv_state = jax.random.normal(ks[11], (B, H, K, K), jnp.float32) * 0.1

  h_out, xs_out, kvs_out = time_mixer_forward(hidden_in, x_state, kv_state,
                                              params)
  jax.block_until_ready((h_out, xs_out, kvs_out))

  h_ref, xs_ref, kvs_ref = time_mixer_reference(hidden_in, x_state, kv_state,
                                                params)
  for got, want in ((h_out, h_ref), (xs_out, xs_ref), (kvs_out, kvs_ref)):
    assert got.shape == want.shape
    assert jnp.allclose(got, want, rtol=1e-2, atol=1e-3), \
        float(jnp.max(jnp.abs(got - want)))

  print("KERNEL_OK")
</pallas_src>

<mosaic_0001>
module attributes {stable_mosaic.version = 11 : i64} {
  func.func @_time_mixer_kernel(%arg0: i32, %arg1: memref<1x8x32xf32, #tpu.memory_space<vmem>>, %arg2: memref<1x1x32xf32, #tpu.memory_space<vmem>>, %arg3: memref<1x8x32xf32, #tpu.memory_space<vmem>>, %arg4: memref<1x32xf32, #tpu.memory_space<vmem>>, %arg5: memref<1x32xf32, #tpu.memory_space<vmem>>, %arg6: memref<32x128xbf16, #tpu.memory_space<vmem>>, %arg7: memref<32x128xbf16, #tpu.memory_space<vmem>>, %arg8: memref<32x32xbf16, #tpu.memory_space<vmem>>, %arg9: memref<1x32xf32, #tpu.memory_space<vmem>>, %arg10: memref<8x32xf32, #tpu.memory_space<vmem>>, %arg11: memref<1x32xf32, #tpu.memory_space<vmem>>, %arg12: memref<1x32xf32, #tpu.memory_space<vmem>>, %arg13: memref<8x32xf32, #tpu.memory_space<vmem>>, %arg14: memref<32x32xf32, #tpu.memory_space<vmem>>, %arg15: memref<32x32xbf16, #tpu.memory_space<vmem>>, %arg16: memref<1x8x32xf32, #tpu.memory_space<vmem>>, %arg17: memref<1x1x32xf32, #tpu.memory_space<vmem>>, %arg18: memref<1x8x32xf32, #tpu.memory_space<vmem>>, %arg19: memref<8x32xf32, #tpu.memory_space<vmem>>, %arg20: memref<8x8x32xf32, #tpu.memory_space<vmem>>, %arg21: memref<8x8x32xf32, #tpu.memory_space<vmem>>) attributes {dimension_semantics = [#tpu.dimension_semantics<parallel>], iteration_bounds = array<i64: 2>, scalar_prefetch = 0 : i64, scratch_operands = 3 : i64, tpu.core_type = #tpu.core_type<tc>, window_params = [{transform_indices = @transform_0, window_bounds = array<i64: 1, 8, 32>}, {transform_indices = @transform_1, window_bounds = array<i64: 1, 1, 32>}, {transform_indices = @transform_2, window_bounds = array<i64: 1, 8, 32>}, {pipeline_mode = #tpu.pipeline_mode<synchronous>, transform_indices = @transform_3, window_bounds = array<i64: 1, 32>}, {pipeline_mode = #tpu.pipeline_mode<synchronous>, transform_indices = @transform_4, window_bounds = array<i64: 1, 32>}, {pipeline_mode = #tpu.pipeline_mode<synchronous>, transform_indices = @transform_5, window_bounds = array<i64: 32, 128>}, {pipeline_mode = #tpu.pipeline_mode<synchronous>, transform_indices = @transform_6, window_bounds = array<i64: 32, 128>}, {pipeline_mode = #tpu.pipeline_mode<synchronous>, transform_indices = @transform_7, window_bounds = array<i64: 32, 32>}, {pipeline_mode = #tpu.pipeline_mode<synchronous>, transform_indices = @transform_8, window_bounds = array<i64: 1, 32>}, {pipeline_mode = #tpu.pipeline_mode<synchronous>, transform_indices = @transform_9, window_bounds = array<i64: 8, 32>}, {pipeline_mode = #tpu.pipeline_mode<synchronous>, transform_indices = @transform_10, window_bounds = array<i64: 1, 32>}, {pipeline_mode = #tpu.pipeline_mode<synchronous>, transform_indices = @transform_11, window_bounds = array<i64: 1, 32>}, {pipeline_mode = #tpu.pipeline_mode<synchronous>, transform_indices = @transform_12, window_bounds = array<i64: 8, 32>}, {pipeline_mode = #tpu.pipeline_mode<synchronous>, transform_indices = @transform_13, window_bounds = array<i64: 32, 32>}, {pipeline_mode = #tpu.pipeline_mode<synchronous>, transform_indices = @transform_14, window_bounds = array<i64: 32, 32>}, {transform_indices = @transform_15, window_bounds = array<i64: 1, 8, 32>}, {transform_indices = @transform_16, window_bounds = array<i64: 1, 1, 32>}, {transform_indices = @transform_17, window_bounds = array<i64: 1, 8, 32>}]} {
    %c0 = arith.constant 0 : index
    %c0_0 = arith.constant 0 : index
    %c0_1 = arith.constant 0 : index
    %0 = vector.load %arg1[%c0, %c0_0, %c0_1] : memref<1x8x32xf32, #tpu.memory_space<vmem>>, vector<1x8x32xf32>
    %1 = vector.shape_cast %0 : vector<1x8x32xf32> to vector<8x32xf32>
    %cst = arith.constant dense<0.000000e+00> : vector<8xf32>
    %2 = vector.multi_reduction <add>, %1, %cst [1] : vector<8x32xf32> to vector<8xf32>
    %3 = vector.shape_cast %2 : vector<8xf32> to vector<8x1xf32>
    %cst_2 = arith.constant 3.200000e+01 : f32
    %4 = vector.broadcast %cst_2 : f32 to vector<8x1xf32>
    %5 = arith.divf %3, %4 : vector<8x1xf32>
    %6 = vector.broadcast %5 : vector<8x1xf32> to vector<8x32xf32>
    %7 = arith.subf %1, %6 : vector<8x32xf32>
    %8 = arith.mulf %7, %7 : vector<8x32xf32>
    %cst_3 = arith.constant dense<0.000000e+00> : vector<8xf32>
    %9 = vector.multi_reduction <add>, %8, %cst_3 [1] : vector<8x32xf32> to vector<8xf32>
    %10 = vector.shape_cast %9 : vector<8xf32> to vector<8x1xf32>
    %cst_4 = arith.constant 3.200000e+01 : f32
    %11 = vector.broadcast %cst_4 : f32 to vector<8x1xf32>
    %12 = arith.divf %10, %11 : vector<8x1xf32>
    %13 = vector.broadcast %5 : vector<8x1xf32> to vector<8x32xf32>
    %14 = arith.subf %1, %13 : vector<8x32xf32>
    %cst_5 = arith.constant 9.99999974E-6 : f32
    %15 = vector.broadcast %cst_5 : f32 to vector<8x1xf32>
    %16 = arith.addf %12, %15 : vector<8x1xf32>
    %17 = math.rsqrt %16 : vector<8x1xf32>
    %18 = vector.broadcast %17 : vector<8x1xf32> to vector<8x32xf32>
    %19 = arith.mulf %14, %18 : vector<8x32xf32>
    %c0_6 = arith.constant 0 : index
    %c0_7 = arith.constant 0 : index
    %20 = vector.load %arg4[%c0_6, %c0_7] : memref<1x32xf32, #tpu.memory_space<vmem>>, vector<1x32xf32>
    %21 = vector.broadcast %20 : vector<1x32xf32> to vector<8x32xf32>
    %22 = arith.mulf %19, %21 : vector<8x32xf32>
    %c0_8 = arith.constant 0 : index
    %c0_9 = arith.constant 0 : index
    %23 = vector.load %arg5[%c0_8, %c0_9] : memref<1x32xf32, #tpu.memory_space<vmem>>, vector<1x32xf32>
    %24 = vector.broadcast %23 : vector<1x32xf32> to vector<8x32xf32>
    %25 = arith.addf %22, %24 : vector<8x32xf32>
    %26 = vector.extract_strided_slice %25 {offsets = [7, 0], sizes = [1, 32], strides = [1, 1]} : vector<8x32xf32> to vector<1x32xf32>
    %c0_10 = arith.constant 0 : index
    %c0_11 = arith.constant 0 : index
    %c0_12 = arith.constant 0 : index
    %27 = vector.load %arg17[%c0_10, %c0_11, %c0_12] : memref<1x1x32xf32, #tpu.memory_space<vmem>>, vector<1x1x32xf32>
    %28 = vector.shape_cast %27 : vector<1x1x32xf32> to vector<1x32xf32>
    %29 = vector.shape_cast %26 : vector<1x32xf32> to vector<1x1x32xf32>
    tpu.vector_store %arg17[%c0_10, %c0_11, %c0_12], %29 {strides = array<i32>} : memref<1x1x32xf32, #tpu.memory_space<vmem>>, vector<1x1x32xf32>,
    %30 = vector.extract_strided_slice %25 {offsets = [0, 0], sizes = [7, 32], strides = [1, 1]} : vector<8x32xf32> to vector<7x32xf32>
    %c1 = arith.constant 1 : index
    %c0_13 = arith.constant 0 : index
    %31 = vector.load %arg19[%c1, %c0_13] : memref<8x32xf32, #tpu.memory_space<vmem>>, vector<7x32xf32>
    tpu.vector_store %arg19[%c1, %c0_13], %30 {strides = array<i32>} : memref<8x32xf32, #tpu.memory_space<vmem>>, vector<7x32xf32>,
    %c0_14 = arith.constant 0 : index
    %c0_15 = arith.constant 0 : index
    %c0_16 = arith.constant 0 : index
    %32 = vector.load %arg2[%c0_14, %c0_15, %c0_16] : memref<1x1x32xf32, #tpu.memory_space<vmem>>, vector<1x1x32xf32>
    %33 = vector.shape_cast %32 : vector<1x1x32xf32> to vector<1x32xf32>
    %c0_17 = arith.constant 0 : index
    %c0_18 = arith.constant 0 : index
    %34 = vector.load %arg19[%c0_17, %c0_18] : memref<8x32xf32, #tpu.memory_space<vmem>>, vector<1x32xf32>
    tpu.vector_store %arg19[%c0_17, %c0_18], %33 {strides = array<i32>} : memref<8x32xf32, #tpu.memory_space<vmem>>, vector<1x32xf32>,
    %c0_19 = arith.constant 0 : index
    %c0_20 = arith.constant 0 : index
    %35 = vector.load %arg19[%c0_19, %c0_20] : memref<8x32xf32, #tpu.memory_space<vmem>>, vector<8x32xf32>
    %36 = arith.truncf %25 : vector<8x32xf32> to vector<8x32xbf16>
    %c0_21 = arith.constant 0 : index
    %c0_22 = arith.constant 0 : index
    %37 = vector.load %arg6[%c0_21, %c0_22] : memref<32x128xbf16, #tpu.memory_space<vmem>>, vector<32x128xbf16>
    %cst_23 = arith.constant dense<0.000000e+00> : vector<8x128xf32>
    %38 = tpu.matmul %36, %37, %cst_23 {dimension_numbers = #tpu.dot_dimension_numbers<[1], [0], [0], [1], [0, 0, 1, 1], [], []>} : vector<8x32xbf16>, vector<32x128xbf16>, vector<8x128xf32> -> vector<8x128xf32>
    %39 = arith.truncf %35 : vector<8x32xf32> to vector<8x32xbf16>
    %c0_24 = arith.constant 0 : index
    %c0_25 = arith.constant 0 : index
    %40 = vector.load %arg7[%c0_24, %c0_25] : memref<32x128xbf16, #tpu.memory_space<vmem>>, vector<32x128xbf16>
    %cst_26 = arith.constant dense<0.000000e+00> : vector<8x128xf32>
    %41 = tpu.matmul %39, %40, %cst_26 {dimension_numbers = #tpu.dot_dimension_numbers<[1], [0], [0], [1], [0, 0, 1, 1], [], []>} : vector<8x32xbf16>, vector<32x128xbf16>, vector<8x128xf32> -> vector<8x128xf32>
    %42 = arith.addf %38, %41 : vector<8x128xf32>
    %43 = vector.extract_strided_slice %42 {offsets = [0, 0], sizes = [8, 32], strides = [1, 1]} : vector<8x128xf32> to vector<8x32xf32>
    %44 = vector.extract_strided_slice %42 {offsets = [0, 32], sizes = [8, 32], strides = [1, 1]} : vector<8x128xf32> to vector<8x32xf32>
    %45 = vector.extract_strided_slice %42 {offsets = [0, 64], sizes = [8, 32], strides = [1, 1]} : vector<8x128xf32> to vector<8x32xf32>
    %46 = vector.extract_strided_slice %42 {offsets = [0, 96], sizes = [8, 32], strides = [1, 1]} : vector<8x128xf32> to vector<8x32xf32>
    %c0_27 = arith.constant 0 : index
    %c0_28 = arith.constant 0 : index
    %47 = vector.load %arg13[%c0_27, %c0_28] : memref<8x32xf32, #tpu.memory_space<vmem>>, vector<8x32xf32>
    %c0_29 = arith.constant 0 : index
    %c0_30 = arith.constant 0 : index
    %48 = vector.load %arg14[%c0_29, %c0_30] : memref<32x32xf32, #tpu.memory_space<vmem>>, vector<32x32xf32>
    %49 = vector.shape_cast %47 : vector<8x32xf32> to vector<1x8x32xf32>
    %50 = vector.shape_cast %43 : vector<8x32xf32> to vector<8x1x32xf32>
    %51 = vector.broadcast %49 : vector<1x8x32xf32> to vector<8x8x32xf32>
    %52 = vector.broadcast %50 : vector<8x1x32xf32> to vector<8x8x32xf32>
    %53 = arith.mulf %51, %52 : vector<8x8x32xf32>
    %54 = vector.shape_cast %53 : vector<8x8x32xf32> to vector<64x32xf32>
    %cst_31 = arith.constant dense<0.000000e+00> : vector<64x32xf32>
    %55 = tpu.matmul %54, %48, %cst_31 {dimension_numbers = #tpu.dot_dimension_numbers<[1], [0], [0], [1], [0, 0, 1, 1], [], []>, precision = #tpu.contract_precision<fp32>} : vector<64x32xf32>, vector<32x32xf32>, vector<64x32xf32> -> vector<64x32xf32>
    %56 = vector.shape_cast %55 : vector<64x32xf32> to vector<8x8x32xf32>
    %c0_32 = arith.constant 0 : index
    %c0_33 = arith.constant 0 : index
    %c0_34 = arith.constant 0 : index
    %57 = vector.load %arg20[%c0_32, %c0_33, %c0_34] : memref<8x8x32xf32, #tpu.memory_space<vmem>>, vector<8x8x32xf32>
    tpu.vector_store %arg20[%c0_32, %c0_33, %c0_34], %56 {strides = array<i32>} : memref<8x8x32xf32, #tpu.memory_space<vmem>>, vector<8x8x32xf32>,
    %58 = vector.shape_cast %47 : vector<8x32xf32> to vector<1x8x32xf32>
    %59 = vector.shape_cast %44 : vector<8x32xf32> to vector<8x1x32xf32>
    %60 = vector.broadcast %58 : vector<1x8x32xf32> to vector<8x8x32xf32>
    %61 = vector.broadcast %59 : vector<8x1x32xf32> to vector<8x8x32xf32>
    %62 = arith.mulf %60, %61 : vector<8x8x32xf32>
    %63 = vector.shape_cast %62 : vector<8x8x32xf32> to vector<64x32xf32>
    %cst_35 = arith.constant dense<0.000000e+00> : vector<64x32xf32>
    %64 = tpu.matmul %63, %48, %cst_35 {dimension_numbers = #tpu.dot_dimension_numbers<[1], [0], [0], [1], [0, 0, 1, 1], [], []>, precision = #tpu.contract_precision<fp32>} : vector<64x32xf32>, vector<32x32xf32>, vector<64x32xf32> -> vector<64x32xf32>
    %65 = vector.shape_cast %64 : vector<64x32xf32> to vector<8x8x32xf32>
    %66 = vector.shape_cast %45 : vector<8x32xf32> to vector<8x1x32xf32>
    %67 = vector.broadcast %66 : vector<8x1x32xf32> to vector<8x8x32xf32>
    %68 = arith.mulf %65, %67 : vector<8x8x32xf32>
    %c0_36 = arith.constant 0 : index
    %c0_37 = arith.constant 0 : index
    %c0_38 = arith.constant 0 : index
    %69 = vector.load %arg21[%c0_36, %c0_37, %c0_38] : memref<8x8x32xf32, #tpu.memory_space<vmem>>, vector<8x8x32xf32>
    tpu.vector_store %arg21[%c0_36, %c0_37, %c0_38], %68 {strides = array<i32>} : memref<8x8x32xf32, #tpu.memory_space<vmem>>, vector<8x8x32xf32>,
    %70 = arith.mulf %43, %44 : vector<8x32xf32>
    %c0_39 = arith.constant 0 : index
    %c0_40 = arith.constant 0 : index
    %71 = vector.load %arg9[%c0_39, %c0_40] : memref<1x32xf32, #tpu.memory_space<vmem>>, vector<1x32xf32>
    %72 = vector.broadcast %71 : vector<1x32xf32> to vector<8x32xf32>
    %73 = arith.mulf %70, %72 : vector<8x32xf32>
    %74 = arith.truncf %73 : vector<8x32xf32> to vector<8x32xbf16>
    %75 = arith.truncf %48 : vector<32x32xf32> to vector<32x32xbf16>
    %cst_41 = arith.constant dense<0.000000e+00> : vector<8x32xf32>
    %76 = tpu.matmul %74, %75, %cst_41 {dimension_numbers = #tpu.dot_dimension_numbers<[1], [0], [0], [1], [0, 0, 1, 1], [], []>} : vector<8x32xbf16>, vector<32x32xbf16>, vector<8x32xf32> -> vector<8x32xf32>
    %77 = arith.mulf %45, %76 : vector<8x32xf32>
    %c0_42 = arith.constant 0 : index
    %c0_43 = arith.constant 0 : index
    %78 = vector.load %arg19[%c0_42, %c0_43] : memref<8x32xf32, #tpu.memory_space<vmem>>, vector<8x32xf32>
    tpu.vector_store %arg19[%c0_42, %c0_43], %77 {strides = array<i32>} : memref<8x32xf32, #tpu.memory_space<vmem>>, vector<8x32xf32>,
    %c0_44 = arith.constant 0 : index
    %c0_45 = arith.constant 0 : index
    %79 = vector.load %arg10[%c0_44, %c0_45] : memref<8x32xf32, #tpu.memory_space<vmem>>, vector<8x32xf32>
    %c0_46 = arith.constant 0 : index
    %c0_47 = arith.constant 0 : index
    %c0_48 = arith.constant 0 : index
    %80 = vector.load %arg3[%c0_46, %c0_47, %c0_48] : memref<1x8x32xf32, #tpu.memory_space<vmem>>, vector<1x8x32xf32>
    %81 = vector.shape_cast %80 : vector<1x8x32xf32> to vector<8x32xf32>
    %c0_i32 = arith.constant 0 : i32
    %82 = arith.index_cast %c0_i32 : i32 to index
    %c0_49 = arith.constant 0 : index
    %83 = vector.load %arg19[%82, %c0_49] : memref<8x32xf32, #tpu.memory_space<vmem>>, vector<1x32xf32>
    %84 = arith.index_cast %c0_i32 : i32 to index
    %c0_50 = arith.constant 0 : index
    %c0_51 = arith.constant 0 : index
    %85 = vector.load %arg20[%84, %c0_50, %c0_51] : memref<8x8x32xf32, #tpu.memory_space<vmem>>, vector<1x8x32xf32>
    %86 = vector.shape_cast %85 : vector<1x8x32xf32> to vector<8x32xf32>
    %87 = arith.mulf %86, %81 : vector<8x32xf32>
    %cst_52 = arith.constant dense<0.000000e+00> : vector<32xf32>
    %88 = vector.multi_reduction <add>, %87, %cst_52 [0] : vector<8x32xf32> to vector<32xf32>
    %89 = vector.shape_cast %88 : vector<32xf32> to vector<1x32xf32>
    %90 = arith.addf %83, %89 : vector<1x32xf32>
    %91 = arith.index_cast %c0_i32 : i32 to index
    %c0_53 = arith.constant 0 : index
    %92 = vector.load %arg19[%91, %c0_53] : memref<8x32xf32, #tpu.memory_space<vmem>>, vector<1x32xf32>
    tpu.vector_store %arg19[%91, %c0_53], %90 {strides = array<i32>} : memref<8x32xf32, #tpu.memory_space<vmem>>, vector<1x32xf32>,
    %93 = arith.mulf %81, %79 : vector<8x32xf32>
    %94 = arith.index_cast %c0_i32 : i32 to index
    %c0_54 = arith.constant 0 : index
    %c0_55 = arith.constant 0 : index
    %95 = vector.load %arg21[%94, %c0_54, %c0_55] : memref<8x8x32xf32, #tpu.memory_space<vmem>>, vector<1x8x32xf32>
    %96 = vector.shape_cast %95 : vector<1x8x32xf32> to vector<8x32xf32>
    %97 = arith.addf %93, %96 : vector<8x32xf32>
    %c1_i32 = arith.constant 1 : i32
    %98 = arith.index_cast %c1_i32 : i32 to index
    %c0_56 = arith.constant 0 : index
    %99 = vector.load %arg19[%98, %c0_56] : memref<8x32xf32, #tpu.memory_space<vmem>>, vector<1x32xf32>
    %100 = arith.index_cast %c1_i32 : i32 to index
    %c0_57 = arith.constant 0 : index
    %c0_58 = arith.constant 0 : index
    %101 = vector.load %arg20[%100, %c0_57, %c0_58] : memref<8x8x32xf32, #tpu.memory_space<vmem>>, vector<1x8x32xf32>
    %102 = vector.shape_cast %101 : vector<1x8x32xf32> to vector<8x32xf32>
    %103 = arith.mulf %102, %97 : vector<8x32xf32>
    %cst_59 = arith.constant dense<0.000000e+00> : vector<32xf32>
    %104 = vector.multi_reduction <add>, %103, %cst_59 [0] : vector<8x32xf32> to vector<32xf32>
    %105 = vector.shape_cast %104 : vector<32xf32> to vector<1x32xf32>
    %106 = arith.addf %99, %105 : vector<1x32xf32>
    %107 = arith.index_cast %c1_i32 : i32 to index
    %c0_60 = arith.constant 0 : index
    %108 = vector.load %arg19[%107, %c0_60] : memref<8x32xf32, #tpu.memory_space<vmem>>, vector<1x32xf32>
    tpu.vector_store %arg19[%107, %c0_60], %106 {strides = array<i32>} : memref<8x32xf32, #tpu.memory_space<vmem>>, vector<1x32xf32>,
    %109 = arith.mulf %97, %79 : vector<8x32xf32>
    %110 = arith.index_cast %c1_i32 : i32 to index
    %c0_61 = arith.constant 0 : index
    %c0_62 = arith.constant 0 : index
    %111 = vector.load %arg21[%110, %c0_61, %c0_62] : memref<8x8x32xf32, #tpu.memory_space<vmem>>, vector<1x8x32xf32>
    %112 = vector.shape_cast %111 : vector<1x8x32xf32> to vector<8x32xf32>
    %113 = arith.addf %109, %112 : vector<8x32xf32>
    %c2_i32 = arith.constant 2 : i32
    %114 = arith.index_cast %c2_i32 : i32 to index
    %c0_63 = arith.constant 0 : index
    %115 = vector.load %arg19[%114, %c0_63] : memref<8x32xf32, #tpu.memory_space<vmem>>, vector<1x32xf32>
    %116 = arith.index_cast %c2_i32 : i32 to index
    %c0_64 = arith.constant 0 : index
    %c0_65 = arith.constant 0 : index
    %117 = vector.load %arg20[%116, %c0_64, %c0_65] : memref<8x8x32xf32, #tpu.memory_space<vmem>>, vector<1x8x32xf32>
    %118 = vector.shape_cast %117 : vector<1x8x32xf32> to vector<8x32xf32>
    %119 = arith.mulf %118, %113 : vector<8x32xf32>
    %cst_66 = arith.constant dense<0.000000e+00> : vector<32xf32>
    %120 = vector.multi_reduction <add>, %119, %cst_66 [0] : vector<8x32xf32> to vector<32xf32>
    %121 = vector.shape_cast %120 : vector<32xf32> to vector<1x32xf32>
    %122 = arith.addf %115, %121 : vector<1x32xf32>
    %123 = arith.index_cast %c2_i32 : i32 to index
    %c0_67 = arith.constant 0 : index
    %124 = vector.load %arg19[%123, %c0_67] : memref<8x32xf32, #tpu.memory_space<vmem>>, vector<1x32xf32>
    tpu.vector_store %arg19[%123, %c0_67], %122 {strides = array<i32>} : memref<8x32xf32, #tpu.memory_space<vmem>>, vector<1x32xf32>,
    %125 = arith.mulf %113, %79 : vector<8x32xf32>
    %126 = arith.index_cast %c2_i32 : i32 to index
    %c0_68 = arith.constant 0 : index
    %c0_69 = arith.constant 0 : index
    %127 = vector.load %arg21[%126, %c0_68, %c0_69] : memref<8x8x32xf32, #tpu.memory_space<vmem>>, vector<1x8x32xf32>
    %128 = vector.shape_cast %127 : vector<1x8x32xf32> to vector<8x32xf32>
    %129 = arith.addf %125, %128 : vector<8x32xf32>
    %c3_i32 = arith.constant 3 : i32
    %130 = arith.index_cast %c3_i32 : i32 to index
    %c0_70 = arith.constant 0 : index
    %131 = vector.load %arg19[%130, %c0_70] : memref<8x32xf32, #tpu.memory_space<vmem>>, vector<1x32xf32>
    %132 = arith.index_cast %c3_i32 : i32 to index
    %c0_71 = arith.constant 0 : index
    %c0_72 = arith.constant 0 : index
    %133 = vector.load %arg20[%132, %c0_71, %c0_72] : memref<8x8x32xf32, #tpu.memory_space<vmem>>, vector<1x8x32xf32>
    %134 = vector.shape_cast %133 : vector<1x8x32xf32> to vector<8x32xf32>
    %135 = arith.mulf %134, %129 : vector<8x32xf32>
    %cst_73 = arith.constant dense<0.000000e+00> : vector<32xf32>
    %136 = vector.multi_reduction <add>, %135, %cst_73 [0] : vector<8x32xf32> to vector<32xf32>
    %137 = vector.shape_cast %136 : vector<32xf32> to vector<1x32xf32>
    %138 = arith.addf %131, %137 : vector<1x32xf32>
    %139 = arith.index_cast %c3_i32 : i32 to index
    %c0_74 = arith.constant 0 : index
    %140 = vector.load %arg19[%139, %c0_74] : memref<8x32xf32, #tpu.memory_space<vmem>>, vector<1x32xf32>
    tpu.vector_store %arg19[%139, %c0_74], %138 {strides = array<i32>} : memref<8x32xf32, #tpu.memory_space<vmem>>, vector<1x32xf32>,
    %141 = arith.mulf %129, %79 : vector<8x32xf32>
    %142 = arith.index_cast %c3_i32 : i32 to index
    %c0_75 = arith.constant 0 : index
    %c0_76 = arith.constant 0 : index
    %143 = vector.load %arg21[%142, %c0_75, %c0_76] : memref<8x8x32xf32, #tpu.memory_space<vmem>>, vector<1x8x32xf32>
    %144 = vector.shape_cast %143 : vector<1x8x32xf32> to vector<8x32xf32>
    %145 = arith.addf %141, %144 : vector<8x32xf32>
    %c4_i32 = arith.constant 4 : i32
    %146 = arith.index_cast %c4_i32 : i32 to index
    %c0_77 = arith.constant 0 : index
    %147 = vector.load %arg19[%146, %c0_77] : memref<8x32xf32, #tpu.memory_space<vmem>>, vector<1x32xf32>
    %148 = arith.index_cast %c4_i32 : i32 to index
    %c0_78 = arith.constant 0 : index
    %c0_79 = arith.constant 0 : index
    %149 = vector.load %arg20[%148, %c0_78, %c0_79] : memref<8x8x32xf32, #tpu.memory_space<vmem>>, vector<1x8x32xf32>
    %150 = vector.shape_cast %149 : vector<1x8x32xf32> to vector<8x32xf32>
    %151 = arith.mulf %150, %145 : vector<8x32xf32>
    %cst_80 = arith.constant dense<0.000000e+00> : vector<32xf32>
    %152 = vector.multi_reduction <add>, %151, %cst_80 [0] : vector<8x32xf32> to vector<32xf32>
    %153 = vector.shape_cast %152 : vector<32xf32> to vector<1x32xf32>
    %154 = arith.addf %147, %153 : vector<1x32xf32>
    %155 = arith.index_cast %c4_i32 : i32 to index
    %c0_81 = arith.constant 0 : index
    %156 = vector.load %arg19[%155, %c0_81] : memref<8x32xf32, #tpu.memory_space<vmem>>, vector<1x32xf32>
    tpu.vector_store %arg19[%155, %c0_81], %154 {strides = array<i32>} : memref<8x32xf32, #tpu.memory_space<vmem>>, vector<1x32xf32>,
    %157 = arith.mulf %145, %79 : vector<8x32xf32>
    %158 = arith.index_cast %c4_i32 : i32 to index
    %c0_82 = arith.constant 0 : index
    %c0_83 = arith.constant 0 : index
    %159 = vector.load %arg21[%158, %c0_82, %c0_83] : memref<8x8x32xf32, #tpu.memory_space<vmem>>, vector<1x8x32xf32>
    %160 = vector.shape_cast %159 : vector<1x8x32xf32> to vector<8x32xf32>
    %161 = arith.addf %157, %160 : vector<8x32xf32>
    %c5_i32 = arith.constant 5 : i32
    %162 = arith.index_cast %c5_i32 : i32 to index
    %c0_84 = arith.constant 0 : index
    %163 = vector.load %arg19[%162, %c0_84] : memref<8x32xf32, #tpu.memory_space<vmem>>, vector<1x32xf32>
    %164 = arith.index_cast %c5_i32 : i32 to index
    %c0_85 = arith.constant 0 : index
    %c0_86 = arith.constant 0 : index
    %165 = vector.load %arg20[%164, %c0_85, %c0_86] : memref<8x8x32xf32, #tpu.memory_space<vmem>>, vector<1x8x32xf32>
    %166 = vector.shape_cast %165 : vector<1x8x32xf32> to vector<8x32xf32>
    %167 = arith.mulf %166, %161 : vector<8x32xf32>
    %cst_87 = arith.constant dense<0.000000e+00> : vector<32xf32>
    %168 = vector.multi_reduction <add>, %167, %cst_87 [0] : vector<8x32xf32> to vector<32xf32>
    %169 = vector.shape_cast %168 : vector<32xf32> to vector<1x32xf32>
    %170 = arith.addf %163, %169 : vector<1x32xf32>
    %171 = arith.index_cast %c5_i32 : i32 to index
    %c0_88 = arith.constant 0 : index
    %172 = vector.load %arg19[%171, %c0_88] : memref<8x32xf32, #tpu.memory_space<vmem>>, vector<1x32xf32>
    tpu.vector_store %arg19[%171, %c0_88], %170 {strides = array<i32>} : memref<8x32xf32, #tpu.memory_space<vmem>>, vector<1x32xf32>,
    %173 = arith.mulf %161, %79 : vector<8x32xf32>
    %174 = arith.index_cast %c5_i32 : i32 to index
    %c0_89 = arith.constant 0 : index
    %c0_90 = arith.constant 0 : index
    %175 = vector.load %arg21[%174, %c0_89, %c0_90] : memref<8x8x32xf32, #tpu.memory_space<vmem>>, vector<1x8x32xf32>
    %176 = vector.shape_cast %175 : vector<1x8x32xf32> to vector<8x32xf32>
    %177 = arith.addf %173, %176 : vector<8x32xf32>
    %c6_i32 = arith.constant 6 : i32
    %178 = arith.index_cast %c6_i32 : i32 to index
    %c0_91 = arith.constant 0 : index
    %179 = vector.load %arg19[%178, %c0_91] : memref<8x32xf32, #tpu.memory_space<vmem>>, vector<1x32xf32>
    %180 = arith.index_cast %c6_i32 : i32 to index
    %c0_92 = arith.constant 0 : index
    %c0_93 = arith.constant 0 : index
    %181 = vector.load %arg20[%180, %c0_92, %c0_93] : memref<8x8x32xf32, #tpu.memory_space<vmem>>, vector<1x8x32xf32>
    %182 = vector.shape_cast %181 : vector<1x8x32xf32> to vector<8x32xf32>
    %183 = arith.mulf %182, %177 : vector<8x32xf32>
    %cst_94 = arith.constant dense<0.000000e+00> : vector<32xf32>
    %184 = vector.multi_reduction <add>, %183, %cst_94 [0] : vector<8x32xf32> to vector<32xf32>
    %185 = vector.shape_cast %184 : vector<32xf32> to vector<1x32xf32>
    %186 = arith.addf %179, %185 : vector<1x32xf32>
    %187 = arith.index_cast %c6_i32 : i32 to index
    %c0_95 = arith.constant 0 : index
    %188 = vector.load %arg19[%187, %c0_95] : memref<8x32xf32, #tpu.memory_space<vmem>>, vector<1x32xf32>
    tpu.vector_store %arg19[%187, %c0_95], %186 {strides = array<i32>} : memref<8x32xf32, #tpu.memory_space<vmem>>, vector<1x32xf32>,
    %189 = arith.mulf %177, %79 : vector<8x32xf32>
    %190 = arith.index_cast %c6_i32 : i32 to index
    %c0_96 = arith.constant 0 : index
    %c0_97 = arith.constant 0 : index
    %191 = vector.load %arg21[%190, %c0_96, %c0_97] : memref<8x8x32xf32, #tpu.memory_space<vmem>>, vector<1x8x32xf32>
    %192 = vector.shape_cast %191 : vector<1x8x32xf32> to vector<8x32xf32>
    %193 = arith.addf %189, %192 : vector<8x32xf32>
    %c7_i32 = arith.constant 7 : i32
    %194 = arith.index_cast %c7_i32 : i32 to index
    %c0_98 = arith.constant 0 : index
    %195 = vector.load %arg19[%194, %c0_98] : memref<8x32xf32, #tpu.memory_space<vmem>>, vector<1x32xf32>
    %196 = arith.index_cast %c7_i32 : i32 to index
    %c0_99 = arith.constant 0 : index
    %c0_100 = arith.constant 0 : index
    %197 = vector.load %arg20[%196, %c0_99, %c0_100] : memref<8x8x32xf32, #tpu.memory_space<vmem>>, vector<1x8x32xf32>
    %198 = vector.shape_cast %197 : vector<1x8x32xf32> to vector<8x32xf32>
    %199 = arith.mulf %198, %193 : vector<8x32xf32>
    %cst_101 = arith.constant dense<0.000000e+00> : vector<32xf32>
    %200 = vector.multi_reduction <add>, %199, %cst_101 [0] : vector<8x32xf32> to vector<32xf32>
    %201 = vector.shape_cast %200 : vector<32xf32> to vector<1x32xf32>
    %202 = arith.addf %195, %201 : vector<1x32xf32>
    %203 = arith.index_cast %c7_i32 : i32 to index
    %c0_102 = arith.constant 0 : index
    %204 = vector.load %arg19[%203, %c0_102] : memref<8x32xf32, #tpu.memory_space<vmem>>, vector<1x32xf32>
    tpu.vector_store %arg19[%203, %c0_102], %202 {strides = array<i32>} : memref<8x32xf32, #tpu.memory_space<vmem>>, vector<1x32xf32>,
    %205 = arith.mulf %193, %79 : vector<8x32xf32>
    %206 = arith.index_cast %c7_i32 : i32 to index
    %c0_103 = arith.constant 0 : index
    %c0_104 = arith.constant 0 : index
    %207 = vector.load %arg21[%206, %c0_103, %c0_104] : memref<8x8x32xf32, #tpu.memory_space<vmem>>, vector<1x8x32xf32>
    %208 = vector.shape_cast %207 : vector<1x8x32xf32> to vector<8x32xf32>
    %209 = arith.addf %205, %208 : vector<8x32xf32>
    %c8_i32 = arith.constant 8 : i32
    %c0_105 = arith.constant 0 : index
    %c0_106 = arith.constant 0 : index
    %c0_107 = arith.constant 0 : index
    %210 = vector.load %arg18[%c0_105, %c0_106, %c0_107] : memref<1x8x32xf32, #tpu.memory_space<vmem>>, vector<1x8x32xf32>
    %211 = vector.shape_cast %210 : vector<1x8x32xf32> to vector<8x32xf32>
    %212 = vector.shape_cast %209 : vector<8x32xf32> to vector<1x8x32xf32>
    tpu.vector_store %arg18[%c0_105, %c0_106, %c0_107], %212 {strides = array<i32>} : memref<1x8x32xf32, #tpu.memory_space<vmem>>, vector<1x8x32xf32>,
    %c0_108 = arith.constant 0 : index
    %c0_109 = arith.constant 0 : index
    %213 = vector.load %arg19[%c0_108, %c0_109] : memref<8x32xf32, #tpu.memory_space<vmem>>, vector<8x32xf32>
    %c0_110 = arith.constant 0 : index
    %c0_111 = arith.constant 0 : index
    %214 = vector.load %arg15[%c0_110, %c0_111] : memref<32x32xbf16, #tpu.memory_space<vmem>>, vector<32x32xbf16>
    %215 = arith.truncf %213 : vector<8x32xf32> to vector<8x32xbf16>
    %cst_112 = arith.constant dense<0.000000e+00> : vector<8x32xf32>
    %216 = tpu.matmul %215, %214, %cst_112 {dimension_numbers = #tpu.dot_dimension_numbers<[1], [0], [0], [1], [0, 0, 1, 1], [], []>} : vector<8x32xbf16>, vector<32x32xbf16>, vector<8x32xf32> -> vector<8x32xf32>
    %217 = arith.subf %213, %216 : vector<8x32xf32>
    %218 = arith.mulf %217, %217 : vector<8x32xf32>
    %219 = arith.truncf %218 : vector<8x32xf32> to vector<8x32xbf16>
    %cst_113 = arith.constant dense<0.000000e+00> : vector<8x32xf32>
    %220 = tpu.matmul %219, %214, %cst_113 {dimension_numbers = #tpu.dot_dimension_numbers<[1], [0], [0], [1], [0, 0, 1, 1], [], []>} : vector<8x32xbf16>, vector<32x32xbf16>, vector<8x32xf32> -> vector<8x32xf32>
    %cst_114 = arith.constant 6.400000e-04 : f32
    %221 = vector.broadcast %cst_114 : f32 to vector<8x32xf32>
    %222 = arith.addf %220, %221 : vector<8x32xf32>
    %223 = math.rsqrt %222 : vector<8x32xf32>
    %224 = arith.mulf %217, %223 : vector<8x32xf32>
    %c0_115 = arith.constant 0 : index
    %c0_116 = arith.constant 0 : index
    %225 = vector.load %arg11[%c0_115, %c0_116] : memref<1x32xf32, #tpu.memory_space<vmem>>, vector<1x32xf32>
    %226 = vector.broadcast %225 : vector<1x32xf32> to vector<8x32xf32>
    %227 = arith.mulf %224, %226 : vector<8x32xf32>
    %c0_117 = arith.constant 0 : index
    %c0_118 = arith.constant 0 : index
    %228 = vector.load %arg12[%c0_117, %c0_118] : memref<1x32xf32, #tpu.memory_space<vmem>>, vector<1x32xf32>
    %229 = vector.broadcast %228 : vector<1x32xf32> to vector<8x32xf32>
    %230 = arith.addf %227, %229 : vector<8x32xf32>
    %231 = arith.negf %46 : vector<8x32xf32>
    %232 = math.exp %231 : vector<8x32xf32>
    %cst_119 = arith.constant 1.000000e+00 : f32
    %233 = vector.broadcast %cst_119 : f32 to vector<8x32xf32>
    %234 = arith.addf %233, %232 : vector<8x32xf32>
    %235 = arith.divf %233, %234 : vector<8x32xf32>
    %236 = arith.mulf %46, %235 : vector<8x32xf32>
    %237 = arith.mulf %230, %236 : vector<8x32xf32>
    %238 = arith.truncf %237 : vector<8x32xf32> to vector<8x32xbf16>
    %c0_120 = arith.constant 0 : index
    %c0_121 = arith.constant 0 : index
    %239 = vector.load %arg8[%c0_120, %c0_121] : memref<32x32xbf16, #tpu.memory_space<vmem>>, vector<32x32xbf16>
    %cst_122 = arith.constant dense<0.000000e+00> : vector<8x32xf32>
    %240 = tpu.matmul %238, %239, %cst_122 {dimension_numbers = #tpu.dot_dimension_numbers<[1], [0], [0], [1], [0, 0, 1, 1], [], []>} : vector<8x32xbf16>, vector<32x32xbf16>, vector<8x32xf32> -> vector<8x32xf32>
    %241 = arith.addf %1, %240 : vector<8x32xf32>
    %c0_123 = arith.constant 0 : index
    %c0_124 = arith.constant 0 : index
    %c0_125 = arith.constant 0 : index
    %242 = vector.load %arg16[%c0_123, %c0_124, %c0_125] : memref<1x8x32xf32, #tpu.memory_space<vmem>>, vector<1x8x32xf32>
    %243 = vector.shape_cast %242 : vector<1x8x32xf32> to vector<8x32xf32>
    %244 = vector.shape_cast %241 : vector<8x32xf32> to vector<1x8x32xf32>
    tpu.vector_store %arg16[%c0_123, %c0_124, %c0_125], %244 {strides = array<i32>} : memref<1x8x32xf32, #tpu.memory_space<vmem>>, vector<1x8x32xf32>,
    return
  }
  func.func @transform_0(%arg0: i32) -> (i32, i32, i32) {
    %c0_i32 = arith.constant 0 : i32
    %c0_i32_0 = arith.constant 0 : i32
    %c0_i32_1 = arith.constant 0 : i32
    return %arg0, %c0_i32, %c0_i32_0 : i32, i32, i32
  }
  func.func @transform_1(%arg0: i32) -> (i32, i32, i32) {
    %c0_i32 = arith.constant 0 : i32
    %c0_i32_0 = arith.constant 0 : i32
    %c0_i32_1 = arith.constant 0 : i32
    return %arg0, %c0_i32, %c0_i32_0 : i32, i32, i32
  }
  func.func @transform_2(%arg0: i32) -> (i32, i32, i32) {
    %c0_i32 = arith.constant 0 : i32
    %c0_i32_0 = arith.constant 0 : i32
    %c0_i32_1 = arith.constant 0 : i32
    return %arg0, %c0_i32, %c0_i32_0 : i32, i32, i32
  }
  func.func @transform_3(%arg0: i32) -> (i32, i32) {
    %c0_i32 = arith.constant 0 : i32
    %c0_i32_0 = arith.constant 0 : i32
    %c0_i32_1 = arith.constant 0 : i32
    return %c0_i32, %c0_i32_0 : i32, i32
  }
  func.func @transform_4(%arg0: i32) -> (i32, i32) {
    %c0_i32 = arith.constant 0 : i32
    %c0_i32_0 = arith.constant 0 : i32
    %c0_i32_1 = arith.constant 0 : i32
    return %c0_i32, %c0_i32_0 : i32, i32
  }
  func.func @transform_5(%arg0: i32) -> (i32, i32) {
    %c0_i32 = arith.constant 0 : i32
    %c0_i32_0 = arith.constant 0 : i32
    %c0_i32_1 = arith.constant 0 : i32
    return %c0_i32, %c0_i32_0 : i32, i32
  }
  func.func @transform_6(%arg0: i32) -> (i32, i32) {
    %c0_i32 = arith.constant 0 : i32
    %c0_i32_0 = arith.constant 0 : i32
    %c0_i32_1 = arith.constant 0 : i32
    return %c0_i32, %c0_i32_0 : i32, i32
  }
  func.func @transform_7(%arg0: i32) -> (i32, i32) {
    %c0_i32 = arith.constant 0 : i32
    %c0_i32_0 = arith.constant 0 : i32
    %c0_i32_1 = arith.constant 0 : i32
    return %c0_i32, %c0_i32_0 : i32, i32
  }
  func.func @transform_8(%arg0: i32) -> (i32, i32) {
    %c0_i32 = arith.constant 0 : i32
    %c0_i32_0 = arith.constant 0 : i32
    %c0_i32_1 = arith.constant 0 : i32
    return %c0_i32, %c0_i32_0 : i32, i32
  }
  func.func @transform_9(%arg0: i32) -> (i32, i32) {
    %c0_i32 = arith.constant 0 : i32
    %c0_i32_0 = arith.constant 0 : i32
    %c0_i32_1 = arith.constant 0 : i32
    return %c0_i32, %c0_i32_0 : i32, i32
  }
  func.func @transform_10(%arg0: i32) -> (i32, i32) {
    %c0_i32 = arith.constant 0 : i32
    %c0_i32_0 = arith.constant 0 : i32
    %c0_i32_1 = arith.constant 0 : i32
    return %c0_i32, %c0_i32_0 : i32, i32
  }
  func.func @transform_11(%arg0: i32) -> (i32, i32) {
    %c0_i32 = arith.constant 0 : i32
    %c0_i32_0 = arith.constant 0 : i32
    %c0_i32_1 = arith.constant 0 : i32
    return %c0_i32, %c0_i32_0 : i32, i32
  }
  func.func @transform_12(%arg0: i32) -> (i32, i32) {
    %c0_i32 = arith.constant 0 : i32
    %c0_i32_0 = arith.constant 0 : i32
    %c0_i32_1 = arith.constant 0 : i32
    return %c0_i32, %c0_i32_0 : i32, i32
  }
  func.func @transform_13(%arg0: i32) -> (i32, i32) {
    %c0_i32 = arith.constant 0 : i32
    %c0_i32_0 = arith.constant 0 : i32
    %c0_i32_1 = arith.constant 0 : i32
    return %c0_i32, %c0_i32_0 : i32, i32
  }
  func.func @transform_14(%arg0: i32) -> (i32, i32) {
    %c0_i32 = arith.constant 0 : i32
    %c0_i32_0 = arith.constant 0 : i32
    %c0_i32_1 = arith.constant 0 : i32
    return %c0_i32, %c0_i32_0 : i32, i32
  }
  func.func @transform_15(%arg0: i32) -> (i32, i32, i32) {
    %c0_i32 = arith.constant 0 : i32
    %c0_i32_0 = arith.constant 0 : i32
    %c0_i32_1 = arith.constant 0 : i32
    return %arg0, %c0_i32, %c0_i32_0 : i32, i32, i32
  }
  func.func @transform_16(%arg0: i32) -> (i32, i32, i32) {
    %c0_i32 = arith.constant 0 : i32
    %c0_i32_0 = arith.constant 0 : i32
    %c0_i32_1 = arith.constant 0 : i32
    return %arg0, %c0_i32, %c0_i32_0 : i32, i32, i32
  }
  func.func @transform_17(%arg0: i32) -> (i32, i32, i32) {
    %c0_i32 = arith.constant 0 : i32
    %c0_i32_0 = arith.constant 0 : i32
    %c0_i32_1 = arith.constant 0 : i32
    return %arg0, %c0_i32, %c0_i32_0 : i32, i32, i32
  }
}

</mosaic_0001>

<bundles_post_ra>
// kernel: time_mixer_forward.1
= control target key start
LH: loop header
LB: loop body
LE: loop exit
PB: predicated region body
PF: predicated region fallthrough
CT: control target
= control target key end

     0   :  { %s4598_s0 = inlined_call_operand.vmem [shape: f32[2,8,32], index: 0, kind: input, shape index: {}]   ;;  %s4599_s1 = inlined_call_operand.vmem [shape: f32[2,1,32], index: 1, kind: input, shape index: {}]   ;;  %s4600_s2 = inlined_call_operand.vmem [shape: f32[2,8,32], index: 2, kind: input, shape index: {}, may-alias: {2,17}]   ;;  %s4601_s3 = inlined_call_operand.vmem [shape: f32[1,32], index: 3, kind: input, shape index: {}]   ;;  %s4602_s4 = inlined_call_operand.vmem [shape: f32[1,32], index: 4, kind: input, shape index: {}]   ;;  %s4603_s5 = inlined_call_operand.vmem [shape: bf16[32,128], index: 5, kind: input, shape index: {}]   ;;  %s4604_s6 = inlined_call_operand.vmem [shape: bf16[32,128], index: 6, kind: input, shape index: {}]   ;;  %s4605_s7 = inlined_call_operand.vmem [shape: bf16[32,32], index: 7, kind: input, shape index: {}]   ;;  %s4606_s8 = inlined_call_operand.vmem [shape: f32[1,32], index: 8, kind: input, shape index: {}]   ;;  %s4607_s9 = inlined_call_operand.vmem [shape: f32[8,32], index: 9, kind: input, shape index: {}]   ;;  %s4608_s10 = inlined_call_operand.vmem [shape: f32[1,32], index: 10, kind: input, shape index: {}]   ;;  %s4609_s11 = inlined_call_operand.vmem [shape: f32[1,32], index: 11, kind: input, shape index: {}]   ;;  %s4610_s12 = inlined_call_operand.vmem [shape: f32[8,32], index: 12, kind: input, shape index: {}]   ;;  %s4611_s13 = inlined_call_operand.vmem [shape: f32[32,32], index: 13, kind: input, shape index: {}]   ;;  %s4612_s14 = inlined_call_operand.vmem [shape: bf16[32,32], index: 14, kind: input, shape index: {}]   ;;  %s4613_s15 = inlined_call_operand.hbm [shape: f32[2,8,32], index: 15, kind: output, shape index: {0}]   ;;  %s4614_s16 = inlined_call_operand.hbm [shape: f32[2,1,32], index: 16, kind: output, shape index: {1}]   ;;  %s4615_s17 = inlined_call_operand.vmem [shape: f32[2,8,32], index: 17, kind: output, shape index: {2}, may-alias: {2,17}]  }
   0x1   :  { %4620 = sst [smem:[#allocation15_spill]] %s4598_s0 }
   0x2   :  { %4621 = sst [smem:[#allocation16_spill]] %s4599_s1 }
   0x3   :  { %4622 = sst [smem:[#allocation17_spill]] %s4600_s2 }
   0x4   :  { %4623 = sst [smem:[#allocation18_spill]] %s4601_s3 }
   0x5   :  { %4624 = sst [smem:[#allocation19_spill]] %s4602_s4 }
   0x6   :  { %4625 = sst [smem:[#allocation20_spill]] %s4603_s5 }
   0x7   :  { %4626 = sst [smem:[#allocation21_spill]] %s4604_s6 }
   0x8   :  { %23 = vsyncpa [#allocation6], 0 }
   0x9   :  { %25 = vsyncpa [#allocation6 + $0x1], 0 }
   0xa   :  { %26 = vsyncpa [#allocation8], 0 }
   0xb   :  { %28 = vsyncpa [#allocation8 + $0x1], 0  ;;  %s3873_s24 = smov 0   ;;  %s3875_s25 = smov 0  }
   0xc   :  { %s3877_s26 = smov 0   ;;  %s3879_s27 = smov 0  }
   0xd LB: > { %4627 = sst [smem:[#allocation11_spill]] %s3769_s26  ;;  %s3894_s28 = sadd.s32 4294967295, %s3773_s27   ;;  %s3773_s27 = sphi %s3879_s27, %s4641_s27   ;;  %s3769_s26 = sphi %s3877_s26, %s4643_s26   ;;  %s3765_s25 = sphi %s3875_s25, %s4645_s25   ;;  %s3761_s24 = sphi %s3873_s24, %s4644_s24  }
   0xe   : > { %s3133_s29 = sadd.s32 4294967294, %s3773_s27   ;;  %s3898_s0 = sadd.s32 1, %s3773_s27  }
   0xf   : > { %4628 = sst [smem:[#allocation12_spill]] %s3898_s0  ;;  %s371_s30 = sadd.s32 1, %s3769_s26 }
  0x10   : > { %s368_s18 = ssub.s32 %s3773_s27, %s3898_s0  ;;  %p381_p0 = scmp.ne.s32.totalorder %s3769_s26, %s3765_s25 }
  0x11   : > { %p369_p1 = scmp.eq.s32.totalorder %s368_s18, 0  ;;  %p382_p2 = scmp.eq.s32.totalorder %s3894_s28, 1 }
  0x12   : > { %p387_p3 = scmp.ne.s32.totalorder %s3765_s25, %s3761_s24  ;;  %p388_p4 = scmp.eq.s32.totalorder %s3133_s29, 1 }
  0x13   : > { %s3909_s19 = scalar_select %p369_p1, %s3769_s26, %s371_s30  }
  0x14   : > { %p3911_p5 = por %p382_p2, %p381_p0  ;;  %p3915_p6 = por %p388_p4, %p387_p3 }
  0x15   : > { %4629 = sst [smem:[#allocation13_spill]] %s3909_s19  ;;  %p3136_p7 = scmp.ge.s32.totalorder %s3773_s27, 1 }
  0x16   : > { %s4631_s20 = scalar_select %p3915_p6, 1, 0 }
  0x17   : > { %p514_p8 = scmp.lt.s32.totalorder %s3773_s27, 3 }
  0x18   : > { %4632 = sst [smem:[#allocation14_spill]] %s4631_s20 }
  0x19   : > { %p515_p9 = pnand %p3136_p7, %p514_p8 }
  0x1a   : > { %p580_p10 = scmp.lt.s32.totalorder (!%p515_p9), %s3894_s28, 1  ;;  %s4633_s30 = sld [smem:[#allocation16_spill]] (!%p515_p9) }
  0x1b   : > { %518 = sbr.rel (%p515_p9) target bundleno = 1819 (0x71b), region = 80  ;;  %s4634_s0 = sld [smem:[#allocation15_spill]] (!%p515_p9) }
  0x1c   : > { %s4635_s5 = sld [smem:[#allocation20_spill]] (!%p515_p9)  ;;  %s3962_s26 = sand.u32 (!%p515_p9), 1, %s3765_s25  }
  0x1d   : > { %s4636_s6 = sld [smem:[#allocation21_spill]] (!%p515_p9)  ;;  %s573_s29 = scalar_lea.vmem (!%p515_p9), [#allocation7], %s3962_s26 }
  0x1e   : > { %s4637_s3 = sld [smem:[#allocation18_spill]] (!%p515_p9)  ;;  %s3779_s19 = smov (!%p515_p9), 64  }
  0x1f   : > { %s4638_s4 = sld [smem:[#allocation19_spill]] (!%p515_p9) }
  0x20   : > { %s581_s21 = scalar_select %p580_p10, %s3894_s28, 1  ;;  %vm633_vm0 = vcmask 253952   ;;  %vm597_vm1 = vcmask 261120   ;;  %v3775_v9 = vmov 0.0   ;;  %vm3776_vm2 = vmmov 0   ;;  %v3975_v25 = vld [vmem:[%s4611_s13 + $0x18] sm:$0xff] }
  0x21   : > { %3336 = vmatprep.subr.bf16.mxu1 %v3775_v9  ;;  %3328 = vmatprep.subr.bf16.mxu0 %v3775_v9  ;;  %vm630_vm3 = vcmask 260096   ;;  %vm628_vm4 = vcmask 261127   ;;  %v3978_v26 = vand.u32 4294901760, %v3975_v25  ;;  %v3983_v27 = vld [vmem:[%s4611_s13 + $0x10] sm:$0xff]  ;;  %v3996_v30 = vld [vmem:[%s4611_s13 + $0x8] sm:$0xff]  ;;  %v4013_v34 = vld [vmem:[%s4611_s13] sm:$0xff]  ;;  %v766_v51 = vlaneseq }
  0x22   : > { %s3923_s22 = sshll.u32 %s581_s21, 3  ;;  %s586_s18 = scalar_lea.vmem %s4633_s30, %s581_s21  ;;  %v3666_v8 = vld [vmem:[%s4635_s5 + $0x8] sm:$0xff]   ;;  %v3667_v10 = vld [vmem:[%s4635_s5] sm:$0xff]   ;;  %3340 = vmatprep.mubr.msk.bf16.mxu1 %vm3776_vm2, %v3775_v9  ;;  %3332 = vmatprep.mubr.msk.bf16.mxu0 %vm3776_vm2, %v3775_v9  ;;  %v3990_v29 = vand.u32 4294901760, %v3983_v27  ;;  %v4007_v33 = vand.u32 4294901760, %v3996_v30  ;;  %v4026_v38 = vand.u32 4294901760, %v4013_v34 }
  0x23   : > { %s3932_s20 = scalar_lea.vmem %s4634_s0, %s3923_s22  ;;  %v632_v0 = vld [vmem:[%s586_s18] sm:$0x1]  ;;  %3337 = vmatpush3.bf16.msra.mxu1 %v3666_v8  ;;  %v3668_v11 = vld [vmem:[%s4636_s6 + $0x8] sm:$0xff]   ;;  %v3987_v28 = vsub.f32 %v3975_v25, %v3978_v26  ;;  %v3777_v49 = vmov 1966171168   ;;  %v767_v55 = vshrl.u32 %v766_v51, 7  ;;  %s594_s23 = scalar_lea.vmem %s4615_s17, %s3923_s22 }
  0x24   : > { %v596_v1 = vld [vmem:[%s3932_s20] sm:$0xff]  ;;  %634 = vst.msk [vmem:[#allocation2] sm:$0x1] %vm633_vm0, %v632_v0  ;;  %3338 = vmatprep.subr.bf16.mxu1 %v3775_v9  ;;  %3329 = vmatpush3.bf16.msra.mxu0 %v3668_v11  ;;  %v4004_v32 = vsub.f32 %v3983_v27, %v3990_v29  ;;  %v4023_v37 = vsub.f32 %v3996_v30, %v4007_v33  ;;  %v764_v50 = vunpack.c.l.s4 %v3777_v49  ;;  %s3778_s0 = smov 96   ;;  %s3780_s30 = smov 32  }
  0x25   : > { %v598_v2 = vsel %vm597_vm1, %v596_v1, 0.0  ;;  %v3669_v12 = vld [vmem:[%s4636_s6] sm:$0xff]   ;;  %3330 = vmatprep.subr.bf16.mxu0 %v3775_v9  ;;  %v4000_v31 = vand.u32 4294901760, %v3987_v28  ;;  %v4039_v42 = vsub.f32 %v4013_v34, %v4026_v38  ;;  %v813_v63 = vsub.s32 0, %v767_v55  ;;  %s4639_s2 = sld [smem:[#allocation17_spill]]  ;;  %s2969_s21 = scalar_lea.sflag [#allocation8], %s3962_s26 }
  0x26   : > { %599 = vadd.xlane.f32.xlu0 %v598_v2  ;;  %v3141_v17 = vld [vmem:[%s4637_s3] ss:$0 sm:$0xff]  ;;  %v4019_v36 = vand.u32 4294901760, %v4004_v32  ;;  %v4035_v41 = vand.u32 4294901760, %v4023_v37  ;;  %v765_v54 = vunpack.c.0.s8 %v764_v50 }
  0x27   : > { %3339 = vmatpush3.bf16.msra.mxu1 %v3667_v10  ;;  %v3142_v19 = vld [vmem:[%s4638_s4] ss:$0 sm:$0xff]  ;;  %v1060_v35 = vsub.f32 %v3987_v28, %v4000_v31  ;;  %v4049_v45 = vand.u32 4294901760, %v4039_v42 }
  0x28   : > { %3331 = vmatpush3.bf16.msra.mxu0 %v3669_v12  ;;  %v1067_v40 = vsub.f32 %v4004_v32, %v4019_v36  ;;  %v1074_v44 = vsub.f32 %v4023_v37, %v4035_v41  ;;  %v768_v58 = vsub.s32 %v765_v54, %v767_v55 }
  0x29   : > { %3344 = vmatprep.subr.mxu0 %v3978_v26  ;;  %v4030_v39 = vand.u32 4294901760, %v1060_v35  ;;  %v1081_v47 = vsub.f32 %v4039_v42, %v4049_v45 }
  0x2a   : > { %v4044_v43 = vand.u32 4294901760, %v1067_v40  ;;  %v4054_v46 = vand.u32 4294901760, %v1074_v44 }
  0x2b   : > { %3364 = vmatprep.subr.mxu1 %v4030_v39  ;;  %v4060_v48 = vand.u32 4294901760, %v1081_v47 }
  0xaf   : > { %v600_v3 = vpop.xlane.xlu0 %599 }
  0xb0   : > { %v602_v4 = vmul.f32 0.03125, %v600_v3 }
  0xb2   : > { %v603_v5 = vsub.f32 %v596_v1, %v602_v4 }
  0xb4   : > { %v604_v6 = vmul.f32 %v603_v5, %v603_v5 }
  0xb6   : > { %v605_v7 = vsel %vm597_vm1, %v604_v6, 0.0  ;;  %v4074_v6 = vld [vmem:[%s4610_s12] sm:$0xff] }
  0xb7   : > { %606 = vadd.xlane.f32.xlu0 %v605_v7 }
 0x140   : > { %v607_v13 = vpop.xlane.xlu0 %606 }
 0x141   : > { %v608_v14 = vmul.f32 0.03125, %v607_v13 }
 0x143   : > { %v609_v15 = vadd.f32 1e-05, %v608_v14 }
 0x145   : > { %3674 = vrsqrt.f32 %v609_v15 }
 0x152   : > { %v3675_v16 = vpop.eup %3674 }
 0x153   : > { %v611_v18 = vmul.f32 %v3675_v16, %v603_v5 }
 0x155   : > { %v619_v20 = vmul.f32 %v3141_v17, %v611_v18 }
 0x157   : > { %v627_v21 = vadd.f32 %v3142_v19, %v619_v20 }
 0x159   : > { %631 = vst.msk [vmem:[#allocation2 + $0x1] sm:$0x7f] %vm630_vm3, %v627_v21  ;;  %v636_v22 = vpack.c.bf16 %v627_v21, %v627_v21 }
 0x15a   : > { %629 = vst.msk [vmem:[%s573_s29 - $0x7] sm:$0x80] %vm628_vm4, %v627_v21 }
 0x15b   : > { %3341 = vmatmul.mubr.msk.bf16.vlgmr.msra.gmra.mxu1 %vm597_vm1, %v636_v22 }
 0x15c   : > { %3365 = vmatpush3.msra.mxu1 %v4030_v39 }
 0x15d   : > { %3366 = vmatprep.subr.mxu1 %v4044_v43 }
 0x15e   : > { %3367 = vmatpush3.msra.mxu1 %v4044_v43 }
 0x15f   : > { %3368 = vmatprep.subr.mxu1 %v4054_v46 }
 0x160   : > { %v635_v23 = vld [vmem:[#allocation2] sm:$0xff]  ;;  %3369 = vmatpush3.msra.mxu1 %v4054_v46 }
 0x161   : > { %v641_v24 = vpack.c.bf16 %v635_v23, %v635_v23  ;;  %3370 = vmatprep.subr.mxu1 %v4060_v48 }
 0x162   : > { %3371 = vmatpush3.msra.mxu1 %v4060_v48 }
 0x163   : > { %3333 = vmatmul.mubr.msk.bf16.vlgmr.msra.gmra.mxu0 %vm597_vm1, %v641_v24  ;;  %3404 = vmatprep.subr.mxu1 %v3978_v26 }
 0x164   : > { %3345 = vmatpush3.msra.mxu0 %v3978_v26 }
 0x165   : > { %3346 = vmatprep.subr.mxu0 %v3990_v29 }
 0x166   : > { %3347 = vmatpush3.msra.mxu0 %v3990_v29 }
 0x167   : > { %3348 = vmatprep.subr.mxu0 %v4007_v33 }
 0x168   : > { %3349 = vmatpush3.msra.mxu0 %v4007_v33 }
 0x169   : > { %3350 = vmatprep.subr.mxu0 %v4026_v38 }
 0x16a   : > { %3351 = vmatpush3.msra.mxu0 %v4026_v38 }
 0x16b   : > { %3384 = vmatprep.subr.mxu0 %v3987_v28 }
 0x21b   : > { %v750_v52 = vpop.f32.mrf.mxu1 }
 0x21d   : > { %v3342_v53 = vpop.f32.mrf.mxu1 }
 0x21f   : > { %v753_v56 = vpop.f32.mrf.mxu1 }
 0x221   : > { %v3343_v57 = vpop.f32.mrf.mxu1 }
 0x223   : > { %v695_v59 = vpop.f32.mrf.mxu0 }
 0x224   : > { %v4066_v60 = vadd.f32 %v750_v52, %v695_v59 }
 0x225   : > { %v3334_v61 = vpop.f32.mrf.mxu0 }
 0x226   : > { %v769_v62 = vrot.slane %v4066_v60, %v768_v58  ;;  %v762_v0 = vcombine.high %v4066_v60, %v4066_v60  ;;  %v3157_v7 = vmul.f32 -1.442695, %v4066_v60 }
 0x227   : > { %v698_v1 = vpop.f32.mrf.mxu0 }
 0x228   : > { %v785_v2 = vrot.slane %v769_v62, %v768_v58  ;;  %v777_v3 = vcombine.high %v769_v62, %v769_v62  ;;  %v776_v4 = vrot.slane %v762_v0, %v768_v58  ;;  %3676 = vpow2.f32 %v3157_v7 }
 0x229   : > { %v3335_v5 = vpop.f32.mrf.mxu0 }
 0x22a   : > { %v4077_v8 = vrot.slane %v785_v2, %v813_v63  ;;  %v807_v10 = vcombine.high %v785_v2, %v785_v2  ;;  %v799_v11 = vrot.slane %v777_v3, %v768_v58  ;;  %v792_v12 = vrot.slane %v776_v4, %v768_v58 }
 0x22b   : > { %v778_v13 = vcombine.high %v776_v4, %v776_v4 }
 0x22c   : > { %1677 = vrot.lane.b32.xlu1 %v4077_v8, %s3778_s0  ;;  %v851_v14 = vmul.f32 %v4077_v8, %v4074_v6  ;;  %v4083_v15 = vrot.slane %v807_v10, %v813_v63  ;;  %v4085_v16 = vrot.slane %v799_v11, %v813_v63  ;;  %v809_v17 = vcombine.high %v799_v11, %v799_v11 }
 0x22d   : > { %v4087_v18 = vrot.slane %v792_v12, %v813_v63  ;;  %v806_v19 = vrot.slane %v778_v13, %v768_v58  ;;  %v808_v20 = vcombine.high %v792_v12, %v792_v12 }
 0x22e   : > { %1681 = vrot.lane.b32.xlu0 %v4083_v15, %s3778_s0  ;;  %v853_v21 = vmul.f32 %v4083_v15, %v4074_v6  ;;  %v4093_v22 = vrot.slane %v809_v17, %v813_v63  ;;  %v852_v23 = vmul.f32 %v4085_v16, %v4074_v6  ;;  %v860_v24 = vsel %vm597_vm1, %v851_v14, 0 }
 0x22f   : > { %v4098_v35 = vand.u32 4294901760, %v860_v24  ;;  %v810_v40 = vcombine.high %v806_v19, %v806_v19  ;;  %v4100_v44 = vrot.slane %v806_v19, %v813_v63  ;;  %v4102_v47 = vrot.slane %v808_v20, %v813_v63 }
 0x230   : > { %1679 = vrot.lane.b32.xlu1 %v4085_v16, %s3778_s0  ;;  %v863_v49 = vsel %vm597_vm1, %v852_v23, 0  ;;  %v866_v50 = vsel %vm597_vm1, %v853_v21, 0  ;;  %v855_v51 = vmul.f32 %v4087_v18, %v4074_v6  ;;  %v854_v52 = vmul.f32 %v4093_v22, %v4074_v6 }
 0x231   : > { %3372 = vmatprep.mubr.f32.mxu1 %v4098_v35  ;;  %v4113_v53 = vand.u32 4294901760, %v863_v49  ;;  %v4115_v54 = vand.u32 4294901760, %v866_v50  ;;  %v4118_v55 = vsub.f32 %v860_v24, %v4098_v35  ;;  %v856_v56 = vmul.f32 %v4100_v44, %v4074_v6 }
 0x232   : > { %v869_v57 = vsel %vm597_vm1, %v854_v52, 0  ;;  %v872_v58 = vsel %vm597_vm1, %v855_v51, 0  ;;  %v857_v59 = vmul.f32 %v4102_v47, %v4074_v6  ;;  %v4126_v61 = vrot.slane %v810_v40, %v813_v63 }
 0x233   : > { %v4129_v62 = vsub.f32 %v863_v49, %v4113_v53  ;;  %3373 = vmatmul.mubr.f32.vlgmr.msra.gmra.mxu1 %v4113_v53  ;;  %v4132_v0 = vand.u32 4294901760, %v869_v57  ;;  %v4134_v1 = vand.u32 4294901760, %v872_v58  ;;  %v954_v2 = vand.u32 4294901760, %v4118_v55 }
 0x234   : > { %3375 = vmatprep.mubr.f32.mxu1 %v4115_v54  ;;  %1685 = vrot.lane.b32.xlu1 %v4087_v18, %s3778_s0  ;;  %v875_v3 = vsel %vm597_vm1, %v856_v56, 0  ;;  %v4142_v63 = vsub.f32 %v866_v50, %v4115_v54  ;;  %v878_v4 = vsel %vm597_vm1, %v857_v59, 0  ;;  %v858_v5 = vmul.f32 %v4126_v61, %v4074_v6 }
 0x235   : > { %v955_v7 = vsub.f32 %v4118_v55, %v954_v2  ;;  %v964_v10 = vand.u32 4294901760, %v4129_v62  ;;  %v4149_v11 = vand.u32 4294901760, %v875_v3  ;;  %3405 = vmatpush3.msra.mxu1 %v3978_v26  ;;  %v4152_v12 = vand.u32 4294901760, %v878_v4 }
 0x236   : > { %v974_v13 = vand.u32 4294901760, %v4142_v63  ;;  %3406 = vmatprep.subr.mxu1 %v3990_v29  ;;  %v4157_v14 = vsub.f32 %v869_v57, %v4132_v0  ;;  %v881_v17 = vsel %vm597_vm1, %v858_v5, 0  ;;  %v4161_v19 = vsub.f32 %v872_v58, %v4134_v1  ;;  %v3677_v58 = vpop.eup %3676 }
 0x237   : > { %3376 = vmatmul.mubr.f32.gmra.mxu1 %v4132_v0  ;;  %v956_v20 = vand.u32 4294901760, %v955_v7  ;;  %v965_v21 = vsub.f32 %v4129_v62, %v964_v10  ;;  %v4165_v23 = vand.u32 4294901760, %v881_v17  ;;  %v4168_v24 = vsub.f32 %v875_v3, %v4149_v11 }
 0x238   : > { %1683 = vrot.lane.b32.xlu1 %v4093_v22, %s3778_s0  ;;  %3378 = vmatprep.mubr.f32.mxu1 %v4134_v1  ;;  %v975_v40 = vsub.f32 %v4142_v63, %v974_v13  ;;  %v984_v49 = vand.u32 4294901760, %v4157_v14  ;;  %v994_v50 = vand.u32 4294901760, %v4161_v19  ;;  %v4177_v51 = vsub.f32 %v878_v4, %v4152_v12 }
 0x239   : > { %3352 = vmatprep.mubr.f32.mxu0 %v956_v20  ;;  %v966_v52 = vand.u32 4294901760, %v965_v21  ;;  %3407 = vmatpush3.msra.mxu1 %v3990_v29  ;;  %v1004_v56 = vand.u32 4294901760, %v4168_v24  ;;  %v4182_v57 = vsub.f32 %v881_v17, %v4165_v23 }
 0x23a   : > { %v976_v59 = vand.u32 4294901760, %v975_v40  ;;  %v985_v3 = vsub.f32 %v4157_v14, %v984_v49  ;;  %3408 = vmatprep.subr.mxu1 %v4007_v33  ;;  %v995_v5 = vsub.f32 %v4161_v19, %v994_v50  ;;  %v1014_v4 = vand.u32 4294901760, %v4177_v51 }
 0x23b   : > { %3353 = vmatmul.mubr.f32.vlgmr.msra.gmra.mxu0 %v966_v52  ;;  %3379 = vmatmul.mubr.f32.gmra.mxu1 %v4149_v11  ;;  %v1005_v17 = vsub.f32 %v4168_v24, %v1004_v56  ;;  %v1024_v20 = vand.u32 4294901760, %v4182_v57 }
 0x23c   : > { %3355 = vmatprep.mubr.f32.mxu0 %v976_v59  ;;  %1687 = vrot.lane.b32.xlu1 %v4100_v44, %s3778_s0  ;;  %v986_v7 = vand.u32 4294901760, %v985_v3  ;;  %v996_v21 = vand.u32 4294901760, %v995_v5  ;;  %v1015_v40 = vsub.f32 %v4177_v51, %v1014_v4 }
 0x23d   : > { %3381 = vmatprep.mubr.f32.mxu1 %v4152_v12  ;;  %3409 = vmatpush3.msra.mxu1 %v4007_v33  ;;  %v1006_v52 = vand.u32 4294901760, %v1005_v17  ;;  %v1025_v59 = vsub.f32 %v4182_v57, %v1024_v20 }
 0x23e   : > { %3410 = vmatprep.subr.mxu1 %v4026_v38  ;;  %3385 = vmatpush3.msra.mxu0 %v3987_v28  ;;  %v1016_v3 = vand.u32 4294901760, %v1015_v40 }
 0x23f   : > { %3356 = vmatmul.mubr.f32.gmra.mxu0 %v986_v7  ;;  %3382 = vmatmul.mubr.f32.gmra.mxu1 %v4165_v23 }
 0x240   : > { %3358 = vmatprep.mubr.f32.mxu0 %v996_v21  ;;  %1689 = vrot.lane.b32.xlu1 %v4102_v47, %s3778_s0 }
 0x241   : > { %3412 = vmatprep.mubr.f32.mxu1 %v954_v2  ;;  %3411 = vmatpush3.msra.mxu1 %v4026_v38  ;;  %v1026_v2 = vand.u32 4294901760, %v1025_v59 }
 0x242   : > { %3386 = vmatprep.subr.mxu0 %v4004_v32  ;;  %3444 = vmatprep.subr.mxu1 %v3978_v26 }
 0x243   : > { %3359 = vmatmul.mubr.f32.gmra.mxu0 %v1006_v52  ;;  %3413 = vmatmul.mubr.f32.vlgmr.msra.gmra.mxu1 %v964_v10  ;;  %v2892_v10 = vadd.f32 1.0, %v3677_v58 }
 0x244   : > { %3361 = vmatprep.mubr.f32.mxu0 %v1016_v3  ;;  %1691 = vrot.lane.b32.xlu1 %v4126_v61, %s3778_s0 }
 0x245   : > { %3415 = vmatprep.mubr.f32.mxu1 %v974_v13  ;;  %3387 = vmatpush3.msra.mxu0 %v4004_v32  ;;  %3678 = vrcp.f32 %v2892_v10 }
 0x246   : > { %3388 = vmatprep.subr.mxu0 %v4023_v37  ;;  %3445 = vmatpush3.msra.mxu1 %v3978_v26 }
 0x247   : > { %3362 = vmatmul.mubr.f32.gmra.mxu0 %v1026_v2  ;;  %3416 = vmatmul.mubr.f32.gmra.mxu1 %v984_v49 }
 0x248   : > { %3389 = vmatpush3.msra.mxu0 %v4023_v37  ;;  %2559 = vrot.lane.b32.xlu1 %v4066_v60, %s3778_s0  ;;  %s2998_s0 = sshll.u32 %s573_s29, 4  ;;  %s2999_s0 = int_to_ptr.vmem [resolvable:$true] %s2998_s0 }
 0x249   : > { %3392 = vmatprep.mubr.f32.mxu0 %v4118_v55  ;;  %3418 = vmatprep.mubr.f32.mxu1 %v994_v50  ;;  %s3683_s3 = scalar_lea.vmem %s2999_s0, 16 }
 0x24a   : > { %3390 = vmatprep.subr.mxu0 %v4039_v42  ;;  %3446 = vmatprep.subr.mxu1 %v3990_v29  ;;  %p3684_p11 = scmp.ne.s32.totalorder %s2999_s0, %s3683_s3 }
 0x24b   : > { %3391 = vmatpush3.msra.mxu0 %v4039_v42  ;;  %3419 = vmatmul.mubr.f32.gmra.mxu1 %v1004_v56 }
 0x24c   : > { %3393 = vmatmul.mubr.f32.vlgmr.msra.gmra.mxu0 %v4129_v62  ;;  %2519 = vrot.lane.b32.xlu1 %v4077_v8, %s3779_s19  ;;  %p3685_p12 = pnand %p3684_p11, %p3911_p5 }
 0x24d   : > { %3395 = vmatprep.mubr.f32.mxu0 %v4142_v63  ;;  %3421 = vmatprep.mubr.f32.mxu1 %v1014_v4 }
 0x24e   : > { %3447 = vmatpush3.msra.mxu1 %v3990_v29  ;;  %3424 = vmatprep.subr.mxu0 %v4000_v31  ;;  %p3686_p13 = pneg %p3685_p12 }
 0x24f   : > { %3422 = vmatmul.mubr.f32.gmra.mxu1 %v1024_v20  ;;  %3448 = vmatprep.subr.mxu1 %v4007_v33 }
 0x250   : > { %3396 = vmatmul.mubr.f32.gmra.mxu0 %v4157_v14  ;;  %2523 = vrot.lane.b32.xlu1 %v4083_v15, %s3779_s19 }
 0x251   : > { %3398 = vmatprep.mubr.f32.mxu0 %v4161_v19  ;;  %3449 = vmatpush3.msra.mxu1 %v4007_v33 }
 0x252   : > { %3452 = vmatprep.mubr.f32.mxu1 %v4098_v35  ;;  %3450 = vmatprep.subr.mxu1 %v4026_v38  ;;  %v3679_v8 = vpop.eup %3678 }
 0x253   : > { %3451 = vmatpush3.msra.mxu1 %v4026_v38  ;;  %3425 = vmatpush3.msra.mxu0 %v4000_v31  ;;  %v2895_v15 = vmul.f32 %v3679_v8, %v4066_v60 }
 0x254   : > { %3399 = vmatmul.mubr.f32.gmra.mxu0 %v4168_v24  ;;  %3453 = vmatmul.mubr.f32.vlgmr.msra.gmra.mxu1 %v4113_v53 }
 0x255   : > { %2527 = vrot.lane.b32.xlu1 %v4087_v18, %s3779_s19  ;;  %3401 = vmatprep.mubr.f32.mxu0 %v4177_v51 }
 0x256   : > { %3455 = vmatprep.mubr.f32.mxu1 %v4115_v54  ;;  %3426 = vmatprep.subr.mxu0 %v4019_v36 }
 0x257   : > { %3427 = vmatpush3.msra.mxu0 %v4019_v36  ;;  %3484 = vmatprep.subr.mxu1 %v4030_v39 }
 0x258   : > { %3402 = vmatmul.mubr.f32.gmra.mxu0 %v4182_v57  ;;  %3428 = vmatprep.subr.mxu0 %v4035_v41 }
 0x259   : > { %3456 = vmatmul.mubr.f32.gmra.mxu1 %v4132_v0  ;;  %2531 = vrot.lane.b32.xlu1 %v4102_v47, %s3779_s19 }
 0x25a   : > { %3429 = vmatpush3.msra.mxu0 %v4035_v41  ;;  %3432 = vmatprep.mubr.f32.mxu0 %v4098_v35 }
 0x25b   : > { %3458 = vmatprep.mubr.f32.mxu1 %v4134_v1  ;;  %3430 = vmatprep.subr.mxu0 %v4049_v45 }
 0x25c   : > { %3431 = vmatpush3.msra.mxu0 %v4049_v45  ;;  %3485 = vmatpush3.msra.mxu1 %v4030_v39 }
 0x25d   : > { %3433 = vmatmul.mubr.f32.vlgmr.msra.gmra.mxu0 %v4113_v53  ;;  %3459 = vmatmul.mubr.f32.gmra.mxu1 %v4149_v11 }
 0x25e   : > { %2897 = vrot.lane.b32.xlu1 %v2895_v15, %s3780_s30  ;;  %3435 = vmatprep.mubr.f32.mxu0 %v4115_v54 }
 0x25f   : > { %3461 = vmatprep.mubr.f32.mxu1 %v4152_v12  ;;  %3486 = vmatprep.subr.mxu1 %v4044_v43 }
 0x260   : > { %3487 = vmatpush3.msra.mxu1 %v4044_v43  ;;  %3464 = vmatprep.subr.mxu0 %v3978_v26 }
 0x261   : > { %3436 = vmatmul.mubr.f32.gmra.mxu0 %v4132_v0  ;;  %3462 = vmatmul.mubr.f32.gmra.mxu1 %v4165_v23 }
 0x262   : > { %3438 = vmatprep.mubr.f32.mxu0 %v4134_v1  ;;  %3488 = vmatprep.subr.mxu1 %v4054_v46 }
 0x263   : > { %3489 = vmatpush3.msra.mxu1 %v4054_v46  ;;  %3465 = vmatpush3.msra.mxu0 %v3978_v26 }
 0x264   : > { %3490 = vmatprep.subr.mxu1 %v4060_v48  ;;  %3466 = vmatprep.subr.mxu0 %v3990_v29 }
 0x265   : > { %3439 = vmatmul.mubr.f32.gmra.mxu0 %v4149_v11  ;;  %3491 = vmatpush3.msra.mxu1 %v4060_v48 }
 0x266   : > { %3441 = vmatprep.mubr.f32.mxu0 %v4152_v12  ;;  %3467 = vmatpush3.msra.mxu0 %v3990_v29 }
 0x267   : > { %3468 = vmatprep.subr.mxu0 %v4007_v33  ;;  %3524 = vmatprep.subr.mxu1 %v3978_v26 }
 0x268   : > { %3469 = vmatpush3.msra.mxu0 %v4007_v33 }
 0x269   : > { %3442 = vmatmul.mubr.f32.gmra.mxu0 %v4165_v23  ;;  %3470 = vmatprep.subr.mxu0 %v4026_v38 }
 0x26a   : > { %3471 = vmatpush3.msra.mxu0 %v4026_v38 }
 0x26b   : > { %3504 = vmatprep.subr.mxu0 %v3987_v28 }
 0x29e   : > { %v1678_v39 = vpop.permute.xlu1 %1677 }
 0x29f   : > { %v1701_v43 = vmul.f32 %v1678_v39, %v4074_v6 }
 0x2a0   : > { %v1682_v46 = vpop.permute.xlu0 %1681 }
 0x2a1   : > { %v1710_v48 = vsel %vm597_vm1, %v1701_v43, 0  ;;  %v1703_v18 = vmul.f32 %v1682_v46, %v4074_v6 }
 0x2a2   : > { %v4283_v35 = vand.u32 4294901760, %v1710_v48  ;;  %v1680_v47 = vpop.permute.xlu1 %1679 }
 0x2a3   : > { %v1716_v53 = vsel %vm597_vm1, %v1703_v18, 0  ;;  %v1702_v54 = vmul.f32 %v1680_v47, %v4074_v6 }
 0x2a4   : > { %v4288_v55 = vsub.f32 %v1710_v48, %v4283_v35  ;;  %v4290_v62 = vand.u32 4294901760, %v1716_v53  ;;  %3492 = vmatprep.mubr.f32.mxu1 %v4283_v35 }
 0x2a5   : > { %v1713_v0 = vsel %vm597_vm1, %v1702_v54, 0 }
 0x2a6   : > { %v4295_v1 = vsub.f32 %v1716_v53, %v4290_v62  ;;  %v4297_v63 = vand.u32 4294901760, %v1713_v0  ;;  %v1686_v11 = vpop.permute.xlu1 %1685  ;;  %v1804_v12 = vand.u32 4294901760, %v4288_v55 }
 0x2a7   : > { %v1705_v13 = vmul.f32 %v1686_v11, %v4074_v6 }
 0x2a8   : > { %v4302_v14 = vsub.f32 %v1713_v0, %v4297_v63  ;;  %3493 = vmatmul.mubr.f32.vlgmr.msra.gmra.mxu1 %v4297_v63  ;;  %v1805_v19 = vsub.f32 %v4288_v55, %v1804_v12  ;;  %v1824_v23 = vand.u32 4294901760, %v4295_v1 }
 0x2a9   : > { %v1722_v24 = vsel %vm597_vm1, %v1705_v13, 0  ;;  %3495 = vmatprep.mubr.f32.mxu1 %v4290_v62  ;;  %3525 = vmatpush3.msra.mxu1 %v3978_v26 }
 0x2aa   : > { %v1814_v49 = vand.u32 4294901760, %v4302_v14  ;;  %v4313_v50 = vand.u32 4294901760, %v1722_v24  ;;  %v1684_v51 = vpop.permute.xlu1 %1683  ;;  %v1806_v56 = vand.u32 4294901760, %v1805_v19  ;;  %3526 = vmatprep.subr.mxu1 %v3990_v29  ;;  %v1825_v58 = vsub.f32 %v4295_v1, %v1824_v23 }
 0x2ab   : > { %v1704_v57 = vmul.f32 %v1684_v51, %v4074_v6  ;;  %3527 = vmatpush3.msra.mxu1 %v3990_v29 }
 0x2ac   : > { %v1815_v5 = vsub.f32 %v4302_v14, %v1814_v49  ;;  %v4325_v4 = vsub.f32 %v1722_v24, %v4313_v50  ;;  %3472 = vmatprep.mubr.f32.mxu0 %v1806_v56  ;;  %3528 = vmatprep.subr.mxu1 %v4007_v33  ;;  %v1826_v52 = vand.u32 4294901760, %v1825_v58 }
 0x2ad   : > { %v1719_v7 = vsel %vm597_vm1, %v1704_v57, 0  ;;  %3529 = vmatpush3.msra.mxu1 %v4007_v33 }
 0x2ae   : > { %v1816_v17 = vand.u32 4294901760, %v1815_v5  ;;  %v4330_v20 = vand.u32 4294901760, %v1719_v7  ;;  %v1688_v21 = vpop.permute.xlu1 %1687  ;;  %3530 = vmatprep.subr.mxu1 %v4026_v38  ;;  %v1844_v59 = vand.u32 4294901760, %v4325_v4 }
 0x2af   : > { %v1706_v40 = vmul.f32 %v1688_v21, %v4074_v6  ;;  %3531 = vmatpush3.msra.mxu1 %v4026_v38 }
 0x2b0   : > { %v4337_v3 = vsub.f32 %v1719_v7, %v4330_v20  ;;  %3473 = vmatmul.mubr.f32.vlgmr.msra.gmra.mxu0 %v1816_v17  ;;  %3496 = vmatmul.mubr.f32.gmra.mxu1 %v4330_v20  ;;  %v1845_v43 = vsub.f32 %v4325_v4, %v1844_v59 }
 0x2b1   : > { %v1725_v2 = vsel %vm597_vm1, %v1706_v40, 0  ;;  %3475 = vmatprep.mubr.f32.mxu0 %v1826_v52  ;;  %3498 = vmatprep.mubr.f32.mxu1 %v4313_v50 }
 0x2b2   : > { %v4342_v10 = vand.u32 4294901760, %v1725_v2  ;;  %v1690_v8 = vpop.permute.xlu1 %1689  ;;  %v1834_v15 = vand.u32 4294901760, %v4337_v3  ;;  %3505 = vmatpush3.msra.mxu0 %v3987_v28  ;;  %3564 = vmatprep.subr.mxu1 %v3978_v26  ;;  %v1846_v11 = vand.u32 4294901760, %v1845_v43 }
 0x2b3   : > { %v1707_v39 = vmul.f32 %v1690_v8, %v4074_v6  ;;  %3506 = vmatprep.subr.mxu0 %v4004_v32 }
 0x2b4   : > { %v1853_v46 = vsub.f32 %v1725_v2, %v4342_v10  ;;  %3499 = vmatmul.mubr.f32.gmra.mxu1 %v4342_v10  ;;  %v1835_v48 = vsub.f32 %v4337_v3, %v1834_v15  ;;  %3507 = vmatpush3.msra.mxu0 %v4004_v32 }
 0x2b5   : > { %v1728_v18 = vsel %vm597_vm1, %v1707_v39, 0  ;;  %3508 = vmatprep.subr.mxu0 %v4023_v37 }
 0x2b6   : > { %v4356_v28 = vand.u32 4294901760, %v1728_v18  ;;  %v1692_v47 = vpop.permute.xlu1 %1691  ;;  %v1836_v53 = vand.u32 4294901760, %v1835_v48  ;;  %v1854_v54 = vand.u32 4294901760, %v1853_v46  ;;  %3509 = vmatpush3.msra.mxu0 %v4023_v37 }
 0x2b7   : > { %v1708_v0 = vmul.f32 %v1692_v47, %v4074_v6  ;;  %3510 = vmatprep.subr.mxu0 %v4039_v42 }
 0x2b8   : > { %v1863_v13 = vsub.f32 %v1728_v18, %v4356_v28  ;;  %3476 = vmatmul.mubr.f32.gmra.mxu0 %v1836_v53  ;;  %3501 = vmatprep.mubr.f32.mxu1 %v4356_v28  ;;  %v1855_v32 = vsub.f32 %v1853_v46, %v1854_v54 }
 0x2b9   : > { %v1731_v19 = vsel %vm597_vm1, %v1708_v0, 0  ;;  %3478 = vmatprep.mubr.f32.mxu0 %v1846_v11  ;;  %3511 = vmatpush3.msra.mxu0 %v4039_v42 }
 0x2ba   : > { %v4365_v24 = vand.u32 4294901760, %v1731_v19  ;;  %v1856_v51 = vand.u32 4294901760, %v1855_v32  ;;  %v1864_v37 = vand.u32 4294901760, %v1863_v13  ;;  %3544 = vmatprep.subr.mxu0 %v4000_v31 }
 0x2bc   : > { %v1873_v6 = vsub.f32 %v1731_v19, %v4365_v24  ;;  %3479 = vmatmul.mubr.f32.gmra.mxu0 %v1856_v51  ;;  %3502 = vmatmul.mubr.f32.gmra.mxu1 %v4365_v24  ;;  %v1865_v56 = vsub.f32 %v1863_v13, %v1864_v37 }
 0x2bd   : > { %3532 = vmatprep.mubr.f32.mxu1 %v1804_v12 }
 0x2be   : > { %v1866_v57 = vand.u32 4294901760, %v1865_v56  ;;  %v1874_v58 = vand.u32 4294901760, %v1873_v6 }
 0x2c0   : > { %3481 = vmatprep.mubr.f32.mxu0 %v1866_v57  ;;  %3533 = vmatmul.mubr.f32.vlgmr.msra.gmra.mxu1 %v1814_v49  ;;  %v1875_v42 = vsub.f32 %v1873_v6, %v1874_v58 }
 0x2c1   : > { %3535 = vmatprep.mubr.f32.mxu1 %v1824_v23  ;;  %3565 = vmatpush3.msra.mxu1 %v3978_v26  ;;  %v2573_v26 = vpack.c.bf16 %v3975_v25, %v3983_v27  ;;  %v3149_v27 = vld [vmem:[%s4606_s8] ss:$0 sm:$0xff] }
 0x2c2   : > { %v1876_v5 = vand.u32 4294901760, %v1875_v42  ;;  %3566 = vmatprep.subr.mxu1 %v3990_v29 }
 0x2c3   : > { %3567 = vmatpush3.msra.mxu1 %v3990_v29  ;;  %v2572_v29 = vpack.c.bf16 %v3996_v30, %v4013_v34 }
 0x2c4   : > { %3482 = vmatmul.mubr.f32.gmra.mxu0 %v1876_v5  ;;  %3536 = vmatmul.mubr.f32.gmra.mxu1 %v1834_v15 }
 0x2c5   : > { %3512 = vmatprep.mubr.f32.mxu0 %v4288_v55  ;;  %3538 = vmatprep.mubr.f32.mxu1 %v1844_v59 }
 0x2c6   : > { %3568 = vmatprep.subr.mxu1 %v4007_v33 }
 0x2c7   : > { %3569 = vmatpush3.msra.mxu1 %v4007_v33 }
 0x2c8   : > { %3513 = vmatmul.mubr.f32.vlgmr.msra.gmra.mxu0 %v4302_v14  ;;  %3539 = vmatmul.mubr.f32.gmra.mxu1 %v1854_v54 }
 0x2c9   : > { %3545 = vmatpush3.msra.mxu0 %v4000_v31  ;;  %3515 = vmatprep.mubr.f32.mxu0 %v4295_v1  ;;  %v2560_v31 = vpop.permute.xlu1 %2559 }
 0x2ca   : > { %3541 = vmatprep.mubr.f32.mxu1 %v1864_v37  ;;  %3546 = vmatprep.subr.mxu0 %v4019_v36  ;;  %v2562_v25 = vmul.f32 %v2560_v31, %v4066_v60 }
 0x2cb   : > { %3547 = vmatpush3.msra.mxu0 %v4019_v36  ;;  %3570 = vmatprep.subr.mxu1 %v4026_v38 }
 0x2cc   : > { %3516 = vmatmul.mubr.f32.gmra.mxu0 %v4337_v3  ;;  %3542 = vmatmul.mubr.f32.gmra.mxu1 %v1874_v58  ;;  %v2570_v30 = vmul.f32 %v3149_v27, %v2562_v25 }
 0x2cd   : > { %3518 = vmatprep.mubr.f32.mxu0 %v4325_v4  ;;  %3572 = vmatprep.mubr.f32.mxu1 %v4283_v35 }
 0x2ce   : > { %3548 = vmatprep.subr.mxu0 %v4035_v41  ;;  %3571 = vmatpush3.msra.mxu1 %v4026_v38  ;;  %v2571_v33 = vpack.c.bf16 %v2570_v30, %v2570_v30 }
 0x2cf   : > { %3549 = vmatpush3.msra.mxu0 %v4035_v41  ;;  %3592 = vmatprep.subr.bf16.mxu1 %v3775_v9 }
 0x2d0   : > { %3519 = vmatmul.mubr.f32.gmra.mxu0 %v1853_v46  ;;  %3573 = vmatmul.mubr.f32.vlgmr.msra.gmra.mxu1 %v4297_v63 }
 0x2d1   : > { %3521 = vmatprep.mubr.f32.mxu0 %v1863_v13  ;;  %3575 = vmatprep.mubr.f32.mxu1 %v4290_v62 }
 0x2d2   : > { %3550 = vmatprep.subr.mxu0 %v4049_v45 }
 0x2d3   : > { %3551 = vmatpush3.msra.mxu0 %v4049_v45 }
 0x2d4   : > { %3522 = vmatmul.mubr.f32.gmra.mxu0 %v1873_v6  ;;  %3576 = vmatmul.mubr.f32.gmra.mxu1 %v4330_v20 }
 0x2d5   : > { %3552 = vmatprep.mubr.f32.mxu0 %v4283_v35  ;;  %3578 = vmatprep.mubr.f32.mxu1 %v4313_v50 }
 0x2d6   : > { %3584 = vmatprep.subr.bf16.mxu0 %v3775_v9 }
 0x2d8   : > { %3553 = vmatmul.mubr.f32.vlgmr.msra.gmra.mxu0 %v4297_v63  ;;  %3579 = vmatmul.mubr.f32.gmra.mxu1 %v4342_v10 }
 0x2d9   : > { %3585 = vmatpush3.bf16.msra.mxu0 %v2573_v26  ;;  %3555 = vmatprep.mubr.f32.mxu0 %v4290_v62 }
 0x2da   : > { %3581 = vmatprep.mubr.f32.mxu1 %v4356_v28  ;;  %3586 = vmatprep.subr.bf16.mxu0 %v3775_v9 }
 0x2dc   : > { %3556 = vmatmul.mubr.f32.gmra.mxu0 %v4330_v20  ;;  %3582 = vmatmul.mubr.f32.gmra.mxu1 %v4365_v24 }
 0x2dd   : > { %3558 = vmatprep.mubr.f32.mxu0 %v4313_v50  ;;  %3587 = vmatpush3.bf16.msra.mxu0 %v2572_v29 }
 0x2de   : > { %3596 = vmatprep.mubr.msk.bf16.mxu1 %vm3776_vm2, %v3775_v9  ;;  %3600 = vmatprep.subr.bf16.mxu0 %v3775_v9 }
 0x2e0   : > { %3559 = vmatmul.mubr.f32.gmra.mxu0 %v4342_v10 }
 0x2e1   : > { %3561 = vmatprep.mubr.f32.mxu0 %v4356_v28 }
 0x2e4   : > { %3562 = vmatmul.mubr.f32.gmra.mxu0 %v4365_v24 }
 0x2e5   : > { %3588 = vmatprep.mubr.msk.bf16.mxu0 %vm3776_vm2, %v3775_v9 }
 0x2e8   : > { %3589 = vmatmul.mubr.msk.bf16.vlgmr.msra.gmra.mxu0 %vm597_vm1, %v2571_v33 }
 0x2e9   : > { %3604 = vmatprep.mubr.msk.bf16.mxu0 %vm3776_vm2, %v3775_v9 }
 0x2f3   : > { %v3374_v34 = vpop.f32.mrf.mxu1 }
 0x2f5   : > { %v1119_v36 = vpop.f32.mrf.mxu1 }
 0x2f7   : > { %v3377_v38 = vpop.f32.mrf.mxu1 }
 0x2f9   : > { %v1131_v41 = vpop.f32.mrf.mxu1 }
 0x2fb   : > { %v3354_v45 = vpop.f32.mrf.mxu0  ;;  %v3380_v35 = vpop.f32.mrf.mxu1 }
 0x2fc   : > { %v1126_v46 = vadd.f32 %v3374_v34, %v3354_v45 }
 0x2fd   : > { %v958_v55 = vpop.f32.mrf.mxu0  ;;  %v1143_v62 = vpop.f32.mrf.mxu1 }
 0x2fe   : > { %v1120_v28 = vadd.f32 %v1119_v36, %v958_v55 }
 0x2ff   : > { %v3357_v1 = vpop.f32.mrf.mxu0  ;;  %v3383_v63 = vpop.f32.mrf.mxu1 }
 0x300   : > { %v1138_v0 = vadd.f32 %v3377_v38, %v3357_v1 }
 0x301   : > { %v978_v12 = vpop.f32.mrf.mxu0  ;;  %v1155_v14 = vpop.f32.mrf.mxu1 }
 0x302   : > { %v1132_v32 = vadd.f32 %v1131_v41, %v978_v12 }
 0x303   : > { %v3360_v23 = vpop.f32.mrf.mxu0  ;;  %v3414_v49 = vpop.f32.mrf.mxu1 }
 0x304   : > { %v1150_v6 = vadd.f32 %v3380_v35, %v3360_v23 }
 0x305   : > { %v998_v50 = vpop.f32.mrf.mxu0  ;;  %v1367_v4 = vpop.f32.mrf.mxu1 }
 0x306   : > { %v1144_v42 = vadd.f32 %v1143_v62, %v998_v50 }
 0x307   : > { %v3363_v7 = vpop.f32.mrf.mxu0  ;;  %v3417_v17 = vpop.f32.mrf.mxu1 }
 0x308   : > { %v1162_v27 = vadd.f32 %v3383_v63, %v3363_v7 }
 0x309   : > { %v1018_v20 = vpop.f32.mrf.mxu0  ;;  %v1383_v21 = vpop.f32.mrf.mxu1 }
 0x30a   : > { %v1156_v45 = vadd.f32 %v1155_v14, %v1018_v20 }
 0x30b   : > { %v3420_v40 = vpop.f32.mrf.mxu1 }
 0x30c   : > { %v3394_v52 = vpop.f32.mrf.mxu0 }
 0x30d   : > { %v1399_v59 = vpop.f32.mrf.mxu1  ;;  %v1249_v47 = vadd.f32 %v3394_v52, %v1126_v46 }
 0x30e   : > { %v1241_v3 = vpop.f32.mrf.mxu0 }
 0x30f   : > { %v3423_v2 = vpop.f32.mrf.mxu1  ;;  %v1242_v11 = vadd.f32 %v1241_v3, %v1120_v28  ;;  %v1376_v24 = vadd.f32 %v3414_v49, %v1249_v47 }
 0x310   : > { %v3397_v10 = vpop.f32.mrf.mxu0 }
 0x311   : > { %v1415_v8 = vpop.f32.mrf.mxu1  ;;  %v1263_v19 = vadd.f32 %v3397_v10, %v1138_v0  ;;  %v1368_v58 = vadd.f32 %v1367_v4, %v1242_v11 }
 0x312   : > { %v1255_v15 = vpop.f32.mrf.mxu0 }
 0x313   : > { %v1256_v56 = vadd.f32 %v1255_v15, %v1132_v32  ;;  %v1392_v25 = vadd.f32 %v3417_v17, %v1263_v19 }
 0x314   : > { %v3400_v39 = vpop.f32.mrf.mxu0  ;;  %v3454_v43 = vpop.f32.mrf.mxu1 }
 0x315   : > { %v1277_v26 = vadd.f32 %v3400_v39, %v1150_v6  ;;  %v1384_v41 = vadd.f32 %v1383_v21, %v1256_v56 }
 0x316   : > { %v1269_v48 = vpop.f32.mrf.mxu0  ;;  %v1623_v18 = vpop.f32.mrf.mxu1 }
 0x317   : > { %v1270_v34 = vadd.f32 %v1269_v48, %v1144_v42  ;;  %v1408_v12 = vadd.f32 %v3420_v40, %v1277_v26 }
 0x318   : > { %v3403_v53 = vpop.f32.mrf.mxu0 }
 0x319   : > { %v3457_v54 = vpop.f32.mrf.mxu1  ;;  %v1291_v55 = vadd.f32 %v3403_v53, %v1162_v27  ;;  %v1400_v7 = vadd.f32 %v1399_v59, %v1270_v34 }
 0x31a   : > { %v1283_v13 = vpop.f32.mrf.mxu0 }
 0x31b   : > { %v1635_v51 = vpop.f32.mrf.mxu1  ;;  %v1284_v50 = vadd.f32 %v1283_v13, %v1156_v45  ;;  %v1424_v20 = vadd.f32 %v3423_v2, %v1291_v55 }
 0x31d   : > { %v3434_v37 = vpop.f32.mrf.mxu0  ;;  %v3460_v30 = vpop.f32.mrf.mxu1  ;;  %v1416_v15 = vadd.f32 %v1415_v8, %v1284_v50 }
 0x31e   : > { %v1513_v57 = vadd.f32 %v3434_v37, %v1376_v24 }
 0x31f   : > { %v1506_v5 = vpop.f32.mrf.mxu0  ;;  %v1647_v23 = vpop.f32.mrf.mxu1 }
 0x320   : > { %v1630_v29 = vadd.f32 %v3454_v43, %v1513_v57  ;;  %v1507_v31 = vadd.f32 %v1506_v5, %v1368_v58 }
 0x321   : > { %v3437_v33 = vpop.f32.mrf.mxu0  ;;  %v3463_v52 = vpop.f32.mrf.mxu1 }
 0x322   : > { %1670 = vst.msk [vmem:[#allocation3 + $0x8] sm:$0xff] %vm597_vm1, %v1630_v29  ;;  %v1624_v36 = vadd.f32 %v1623_v18, %v1507_v31  ;;  %v1525_v38 = vadd.f32 %v3437_v33, %v1392_v25 }
 0x323   : > { %v1518_v35 = vpop.f32.mrf.mxu0  ;;  %v1659_v48 = vpop.f32.mrf.mxu1 }
 0x324   : > { %1669 = vst.msk [vmem:[#allocation3] sm:$0xff] %vm597_vm1, %v1624_v36  ;;  %v1642_v62 = vadd.f32 %v3457_v54, %v1525_v38  ;;  %v1519_v1 = vadd.f32 %v1518_v35, %v1384_v41 }
 0x325   : > { %v3440_v49 = vpop.f32.mrf.mxu0 }
 0x326   : > { %1672 = vst.msk [vmem:[#allocation3 + $0x18] sm:$0xff] %vm597_vm1, %v1642_v62  ;;  %v1636_v63 = vadd.f32 %v1635_v51, %v1519_v1  ;;  %v1537_v4 = vadd.f32 %v3440_v49, %v1408_v12 }
 0x327   : > { %v1530_v17 = vpop.f32.mrf.mxu0 }
 0x328   : > { %1671 = vst.msk [vmem:[#allocation3 + $0x10] sm:$0xff] %vm597_vm1, %v1636_v63  ;;  %v1654_v21 = vadd.f32 %v3460_v30, %v1537_v4  ;;  %v1531_v14 = vadd.f32 %v1530_v17, %v1400_v7 }
 0x329   : > { %v3443_v3 = vpop.f32.mrf.mxu0 }
 0x32a   : > { %1674 = vst.msk [vmem:[#allocation3 + $0x28] sm:$0xff] %vm597_vm1, %v1654_v21  ;;  %v1648_v10 = vadd.f32 %v1647_v23, %v1531_v14  ;;  %v1549_v40 = vadd.f32 %v3443_v3, %v1424_v20 }
 0x32b   : > { %v1542_v39 = vpop.f32.mrf.mxu0 }
 0x32c   : > { %1673 = vst.msk [vmem:[#allocation3 + $0x20] sm:$0xff] %vm597_vm1, %v1648_v10  ;;  %v1666_v43 = vadd.f32 %v3463_v52, %v1549_v40  ;;  %v1543_v46 = vadd.f32 %v1542_v39, %v1416_v15  ;;  %v2520_v52 = vpop.permute.xlu1 %2519 }
 0x32e   : > { %1676 = vst.msk [vmem:[#allocation3 + $0x38] sm:$0xff] %vm597_vm1, %v1666_v43  ;;  %v1660_v59 = vadd.f32 %v1659_v48, %v1543_v46 }
 0x330   : > { %1675 = vst.msk [vmem:[#allocation3 + $0x30] sm:$0xff] %vm597_vm1, %v1660_v59 }
 0x368   : > { %v3494_v18 = vpop.f32.mrf.mxu1 }
 0x36a   : > { %v1969_v2 = vpop.f32.mrf.mxu1 }
 0x370   : > { %v3474_v28 = vpop.f32.mrf.mxu0  ;;  %v3497_v47 = vpop.f32.mrf.mxu1 }
 0x371   : > { %v1976_v53 = vadd.f32 %v3494_v18, %v3474_v28 }
 0x372   : > { %v1981_v54 = vpop.f32.mrf.mxu1  ;;  %v1808_v0 = vpop.f32.mrf.mxu0 }
 0x373   : > { %v1970_v63 = vadd.f32 %v1969_v2, %v1808_v0 }
 0x374   : > { %v3500_v11 = vpop.f32.mrf.mxu1 }
 0x376   : > { %v1993_v32 = vpop.f32.mrf.mxu1 }
 0x378   : > { %v3477_v8 = vpop.f32.mrf.mxu0 }
 0x379   : > { %v1988_v13 = vadd.f32 %v3497_v47, %v3477_v8 }
 0x37a   : > { %v1828_v19 = vpop.f32.mrf.mxu0 }
 0x37b   : > { %v1982_v3 = vadd.f32 %v1981_v54, %v1828_v19 }
 0x37c   : > { %v3480_v24 = vpop.f32.mrf.mxu0  ;;  %v3503_v51 = vpop.f32.mrf.mxu1 }
 0x37d   : > { %v2000_v37 = vadd.f32 %v3500_v11, %v3480_v24 }
 0x37e   : > { %v2005_v6 = vpop.f32.mrf.mxu1  ;;  %v1848_v57 = vpop.f32.mrf.mxu0 }
 0x37f   : > { %v1994_v59 = vadd.f32 %v1993_v32, %v1848_v57 }
 0x380   : > { %v3534_v56 = vpop.f32.mrf.mxu1 }
 0x382   : > { %v2217_v58 = vpop.f32.mrf.mxu1 }
 0x384   : > { %v3483_v42 = vpop.f32.mrf.mxu0  ;;  %v3537_v5 = vpop.f32.mrf.mxu1 }
 0x385   : > { %v2012_v26 = vadd.f32 %v3503_v51, %v3483_v42 }
 0x386   : > { %v1868_v29 = vpop.f32.mrf.mxu0  ;;  %v2233_v31 = vpop.f32.mrf.mxu1 }
 0x387   : > { %v2006_v51 = vadd.f32 %v2005_v6, %v1868_v29 }
 0x388   : > { %v3514_v25 = vpop.f32.mrf.mxu0  ;;  %v3540_v27 = vpop.f32.mrf.mxu1 }
 0x389   : > { %v2099_v30 = vadd.f32 %v3514_v25, %v1976_v53  ;;  %v2524_v53 = vpop.permute.xlu1 %2523 }
 0x38a   : > { %v2091_v33 = vpop.f32.mrf.mxu0  ;;  %v2249_v34 = vpop.f32.mrf.mxu1 }
 0x38b   : > { %v2226_v36 = vadd.f32 %v3534_v56, %v2099_v30  ;;  %v2092_v21 = vadd.f32 %v2091_v33, %v1970_v63 }
 0x38c   : > { %v3517_v38 = vpop.f32.mrf.mxu0  ;;  %v3543_v41 = vpop.f32.mrf.mxu1 }
 0x38d   : > { %v2113_v45 = vadd.f32 %v3517_v38, %v1988_v13  ;;  %v2218_v46 = vadd.f32 %v2217_v58, %v2092_v21  ;;  %v2528_v25 = vpop.permute.xlu1 %2527  ;;  %v3670_v21 = vld [vmem:[%s4612_s14 + $0x8] sm:$0xff]  }
 0x38e   : > { %v2105_v35 = vpop.f32.mrf.mxu0  ;;  %v2265_v55 = vpop.f32.mrf.mxu1  ;;  %3593 = vmatpush3.bf16.msra.mxu1 %v3670_v21  ;;  %3601 = vmatpush3.bf16.msra.mxu0 %v3670_v21 }
 0x38f   : > { %v2242_v62 = vadd.f32 %v3537_v5, %v2113_v45  ;;  %v2106_v39 = vadd.f32 %v2105_v35, %v1982_v3  ;;  %3594 = vmatprep.subr.bf16.mxu1 %v3775_v9  ;;  %3602 = vmatprep.subr.bf16.mxu0 %v3775_v9 }
 0x390   : > { %v3520_v1 = vpop.f32.mrf.mxu0  ;;  %v3574_v12 = vpop.f32.mrf.mxu1 }
 0x391   : > { %v2127_v23 = vadd.f32 %v3520_v1, %v2000_v37  ;;  %v2234_v13 = vadd.f32 %v2233_v31, %v2106_v39 }
 0x392   : > { %v2119_v49 = vpop.f32.mrf.mxu0  ;;  %v2473_v50 = vpop.f32.mrf.mxu1 }
 0x393   : > { %v2258_v4 = vadd.f32 %v3540_v27, %v2127_v23  ;;  %v2120_v0 = vadd.f32 %v2119_v49, %v1994_v59  ;;  %v2532_v23 = vpop.permute.xlu1 %2531 }
 0x394   : > { %v3523_v7 = vpop.f32.mrf.mxu0  ;;  %v3577_v17 = vpop.f32.mrf.mxu1 }
 0x395   : > { %v2141_v14 = vadd.f32 %v3523_v7, %v2012_v26  ;;  %v2250_v58 = vadd.f32 %v2249_v34, %v2120_v0 }
 0x396   : > { %v2133_v20 = vpop.f32.mrf.mxu0  ;;  %v2485_v40 = vpop.f32.mrf.mxu1 }
 0x397   : > { %v2274_v10 = vadd.f32 %v3543_v41, %v2141_v14  ;;  %v2134_v5 = vadd.f32 %v2133_v20, %v2006_v51  ;;  %v2630_v51 = vld [vmem:[#allocation3] sm:$0xff] }
 0x398   : > { %v3554_v15 = vpop.f32.mrf.mxu0  ;;  %v3580_v47 = vpop.f32.mrf.mxu1 }
 0x399   : > { %v2363_v43 = vadd.f32 %v3554_v15, %v2226_v36  ;;  %v2266_v38 = vadd.f32 %v2265_v55, %v2134_v5 }
 0x39a   : > { %v2356_v48 = vpop.f32.mrf.mxu0  ;;  %v2497_v56 = vpop.f32.mrf.mxu1 }
 0x39b   : > { %v2357_v18 = vadd.f32 %v2356_v48, %v2218_v46  ;;  %v2480_v28 = vadd.f32 %v3574_v12, %v2363_v43 }
 0x39c   : > { %v3557_v2 = vpop.f32.mrf.mxu0  ;;  %v3583_v36 = vpop.f32.mrf.mxu1 }
 0x39d   : > { %v2474_v11 = vadd.f32 %v2473_v50, %v2357_v18  ;;  %v2375_v8 = vadd.f32 %v3557_v2, %v2242_v62 }
 0x39e   : > { %v2368_v24 = vpop.f32.mrf.mxu0  ;;  %v2509_v1 = vpop.f32.mrf.mxu1 }
 0x39f   : > { %v2543_v54 = vmul.f32 %v2520_v52, %v2474_v11  ;;  %v2369_v19 = vadd.f32 %v2368_v24, %v2234_v13  ;;  %v2492_v37 = vadd.f32 %v3577_v17, %v2375_v8 }
 0x3a0   : > { %v3560_v42 = vpop.f32.mrf.mxu0 }
 0x3a1   : > { %2551 = vst.msk [vmem:[#allocation4] sm:$0xff] %vm597_vm1, %v2543_v54  ;;  %v2486_v32 = vadd.f32 %v2485_v40, %v2369_v19  ;;  %v2387_v57 = vadd.f32 %v3560_v42, %v2258_v4  ;;  %v2663_v42 = vld [vmem:[#allocation3 + $0x10] sm:$0xff] }
 0x3a2   : > { %v2380_v26 = vpop.f32.mrf.mxu0 }
 0x3a3   : > { %v2545_v27 = vmul.f32 %v2524_v53, %v2486_v32  ;;  %v2381_v30 = vadd.f32 %v2380_v26, %v2250_v58  ;;  %v2504_v33 = vadd.f32 %v3580_v47, %v2387_v57  ;;  %v2714_v32 = vld [vmem:[#allocation3 + $0x28] sm:$0xff]  ;;  %v2697_v57 = vld [vmem:[#allocation3 + $0x20] sm:$0xff]  ;;  %v2731_v58 = vld [vmem:[#allocation3 + $0x30] sm:$0xff] }
 0x3a4   : > { %v3563_v31 = vpop.f32.mrf.mxu0 }
 0x3a5   : > { %2553 = vst.msk [vmem:[#allocation4 + $0x10] sm:$0xff] %vm597_vm1, %v2545_v27  ;;  %v2498_v6 = vadd.f32 %v2497_v56, %v2381_v30  ;;  %v2399_v29 = vadd.f32 %v3563_v31, %v2274_v10  ;;  %v2680_v56 = vld [vmem:[#allocation3 + $0x18] sm:$0xff] }
 0x3a6   : > { %v2392_v41 = vpop.f32.mrf.mxu0  ;;  %v2748_v27 = vld [vmem:[#allocation3 + $0x38] sm:$0xff] }
 0x3a7   : > { %v2547_v45 = vmul.f32 %v2528_v25, %v2498_v6  ;;  %v2393_v35 = vadd.f32 %v2392_v41, %v2266_v38  ;;  %v4440_v62 = vadd.f32 %v3583_v36, %v2399_v29 }
 0x3a8   : > { %v2611_v12 = vpop.f32.mrf.mxu0  ;;  %v2642_v10 = vld [vmem:[#allocation4] sm:$0xff] }
 0x3a9   : > { %2555 = vst.msk [vmem:[#allocation4 + $0x20] sm:$0xff] %vm597_vm1, %v2547_v45  ;;  %v2510_v34 = vadd.f32 %v2509_v1, %v2393_v35  ;;  %2618 = vrot.lane.b32.xlu0 %v2611_v12, %s3779_s19 }
 0x3aa   : > { %v3590_v49 = vpop.f32.mrf.mxu0 }
 0x3ab   : > { %v2549_v50 = vmul.f32 %v2532_v23, %v2510_v34 }
 0x3ac   : > { %v2614_v63 = vpop.f32.mrf.mxu0  ;;  %v2676_v48 = vld [vmem:[#allocation4 + $0x10] sm:$0xff] }
 0x3ad   : > { %2557 = vst.msk [vmem:[#allocation4 + $0x30] sm:$0xff] %vm597_vm1, %v2549_v50  ;;  %2521 = vrot.lane.b32.xlu0 %v4085_v16, %s3779_s19  ;;  %v3671_v16 = vld [vmem:[%s4612_s14] sm:$0xff]  }
 0x3ae   : > { %v3591_v55 = vpop.f32.mrf.mxu0  ;;  %3595 = vmatpush3.bf16.msra.mxu1 %v3671_v16  ;;  %3603 = vmatpush3.bf16.msra.mxu0 %v3671_v16 }
 0x3af   : > { %3608 = vmatprep.subr.bf16.mxu1 %v3775_v9 }
 0x3b0   : > { %v2710_v53 = vld [vmem:[#allocation4 + $0x20] sm:$0xff] }
 0x3b1   : > { %2525 = vrot.lane.b32.xlu0 %v4093_v22, %s3779_s19 }
 0x3b4   : > { %v2744_v54 = vld [vmem:[#allocation4 + $0x30] sm:$0xff] }
 0x3b5   : > { %2529 = vrot.lane.b32.xlu0 %v4100_v44, %s3779_s19 }
 0x41b   : > { %v2619_v4 = vpop.permute.xlu0 %2618 }
 0x41c   : > { %v2621_v7 = vmul.f32 %v2619_v4, %v4066_v60 }
 0x41e   : > { %2623 = vrot.lane.b32.xlu0 %v2621_v7, %s3779_s19 }
 0x41f   : > { %v2522_v17 = vpop.permute.xlu0 %2521 }
 0x420   : > { %v2544_v14 = vmul.f32 %v2522_v17, %v2480_v28 }
 0x422   : > { %2552 = vst.msk [vmem:[#allocation4 + $0x8] sm:$0xff] %vm597_vm1, %v2544_v14  ;;  %2533 = vrot.lane.b32.xlu0 %v4126_v61, %s3779_s19  ;;  %s590_s19 = scalar_lea.vmem %s4639_s2, %s3923_s22  ;;  %v4474_v61 = vld [vmem:[%s4607_s9] sm:$0xff] }
 0x423   : > { %v2526_v60 = vpop.permute.xlu0 %2525  ;;  %v2628_v52 = vld [vmem:[%s590_s19] sm:$0xff]  ;;  %s3163_s19 = sshll.u32 %s3894_s28, 4 }
 0x424   : > { %v2546_v22 = vmul.f32 %v2526_v60, %v2492_v37  ;;  %v2641_v3 = vmul.f32 %v2628_v52, %v4474_v61  ;;  %v2646_v37 = vld [vmem:[#allocation3 + $0x8] sm:$0xff]  ;;  %v2631_v5 = vmul.f32 %v2630_v51, %v2628_v52  ;;  %s2996_s18 = scalar_lea.hbm %s4614_s16, %s3163_s19 }
 0x426   : > { %2554 = vst.msk [vmem:[#allocation4 + $0x18] sm:$0xff] %vm597_vm1, %v2546_v22  ;;  %v2643_v40 = vadd.f32 %v2642_v10, %v2641_v3  ;;  %v2632_v29 = vsel %vm597_vm1, %v2631_v5, 0.0 }
 0x427   : > { %v2530_v44 = vpop.permute.xlu0 %2529  ;;  %v2633_v23 = vrot.slane %v2632_v29, 4 }
 0x428   : > { %v2548_v20 = vmul.f32 %v2530_v44, %v2504_v33  ;;  %v2657_v39 = vmul.f32 %v2643_v40, %v4474_v61  ;;  %v2647_v26 = vmul.f32 %v2646_v37, %v2643_v40 }
 0x429   : > { %v2659_v15 = vld [vmem:[#allocation4 + $0x8] sm:$0xff]  ;;  %v2634_v21 = vadd.f32 %v2633_v23, %v2632_v29 }
 0x42a   : > { %2556 = vst.msk [vmem:[#allocation4 + $0x28] sm:$0xff] %vm597_vm1, %v2548_v20  ;;  %v2660_v43 = vadd.f32 %v2659_v15, %v2657_v39  ;;  %v2648_v38 = vsel %vm597_vm1, %v2647_v26, 0.0 }
 0x42b   : > { %v2649_v49 = vrot.slane %v2648_v38, 4  ;;  %v2635_v3 = vrot.slane %v2634_v21, 2 }
 0x42c   : > { %v2674_v46 = vmul.f32 %v2660_v43, %v4474_v61  ;;  %v2664_v25 = vmul.f32 %v2663_v42, %v2660_v43 }
 0x42d   : > { %v2693_v28 = vld [vmem:[#allocation4 + $0x18] sm:$0xff]  ;;  %v2650_v14 = vadd.f32 %v2649_v49, %v2648_v38 }
 0x42e   : > { %v2677_v59 = vadd.f32 %v2676_v48, %v2674_v46  ;;  %v2665_v41 = vsel %vm597_vm1, %v2664_v25, 0.0 }
 0x42f   : > { %v2666_v50 = vrot.slane %v2665_v41, 4  ;;  %v2651_v40 = vrot.slane %v2650_v14, 2 }
 0x430   : > { %v2691_v18 = vmul.f32 %v2677_v59, %v4474_v61  ;;  %v2681_v30 = vmul.f32 %v2680_v56, %v2677_v59  ;;  %v2636_v59 = vadd.f32 %v2635_v3, %v2634_v21  ;;  %v3672_v3 = vld [vmem:[%s4605_s7 + $0x8] sm:$0xff]  }
 0x431   : > { %v2727_v8 = vld [vmem:[#allocation4 + $0x28] sm:$0xff]  ;;  %v2667_v16 = vadd.f32 %v2666_v50, %v2665_v41 }
 0x432   : > { %v2694_v47 = vadd.f32 %v2693_v28, %v2691_v18  ;;  %v2682_v45 = vsel %vm597_vm1, %v2681_v30, 0.0  ;;  %v2652_v28 = vadd.f32 %v2651_v40, %v2650_v14 }
 0x433   : > { %v2683_v63 = vrot.slane %v2682_v45, 4  ;;  %v2668_v10 = vrot.slane %v2667_v16, 2 }
 0x434   : > { %v2708_v2 = vmul.f32 %v2694_v47, %v4474_v61  ;;  %v2698_v33 = vmul.f32 %v2697_v57, %v2694_v47 }
 0x435   : > { %v2684_v60 = vadd.f32 %v2683_v63, %v2682_v45  ;;  %v2669_v18 = vadd.f32 %v2668_v10, %v2667_v16  ;;  %v3673_v10 = vld [vmem:[%s4605_s7] sm:$0xff]  }
 0x436   : > { %v2711_v0 = vadd.f32 %v2710_v53, %v2708_v2  ;;  %v2699_v35 = vsel %vm597_vm1, %v2698_v33, 0.0 }
 0x437   : > { %v2700_v55 = vrot.slane %v2699_v35, 4  ;;  %v2685_v43 = vrot.slane %v2684_v60, 2  ;;  %v2670_v51 = vrot.slane %v2669_v18, 1 }
 0x438   : > { %v2725_v11 = vmul.f32 %v2711_v0, %v4474_v61  ;;  %v2715_v36 = vmul.f32 %v2714_v32, %v2711_v0 }
 0x439   : > { %v2701_v22 = vadd.f32 %v2700_v55, %v2699_v35  ;;  %v2686_v0 = vadd.f32 %v2685_v43, %v2684_v60  ;;  %v2671_v25 = vadd.f32 %v2670_v51, %v2669_v18 }
 0x43a   : > { %v2728_v13 = vadd.f32 %v2727_v8, %v2725_v11  ;;  %v2716_v1 = vsel %vm597_vm1, %v2715_v36, 0.0 }
 0x43b   : > { %v2717_v4 = vrot.slane %v2716_v1, 4  ;;  %v2702_v15 = vrot.slane %v2701_v22, 2 }
 0x43c   : > { %v2742_v24 = vmul.f32 %v2728_v13, %v4474_v61  ;;  %v2732_v31 = vmul.f32 %v2731_v58, %v2728_v13  ;;  %v2637_v13 = vrot.slane %v2636_v59, 1 }
 0x43d   : > { %v2718_v44 = vadd.f32 %v2717_v4, %v2716_v1  ;;  %v2703_v47 = vadd.f32 %v2702_v15, %v2701_v22 }
 0x43e   : > { %v4483_v19 = vadd.f32 %v2744_v54, %v2742_v24  ;;  %v2733_v12 = vsel %vm597_vm1, %v2732_v31, 0.0  ;;  %v2653_v24 = vrot.slane %v2652_v28, 1  ;;  %v2687_v54 = vrot.slane %v2686_v0, 1 }
 0x43f   : > { %v2734_v7 = vrot.slane %v2733_v12, 4  ;;  %v2719_v46 = vrot.slane %v2718_v44, 2  ;;  %v2704_v37 = vrot.slane %v2703_v47, 1  ;;  %v2638_v58 = vadd.f32 %v2637_v13, %v2636_v59  ;;  %v3155_v59 = vld [vmem:[%s4608_s10] ss:$0 sm:$0xff] }
 0x440   : > { %v2749_v6 = vmul.f32 %v2748_v27, %v4483_v19  ;;  %v2654_v26 = vadd.f32 %v2653_v24, %v2652_v28  ;;  %v2688_v36 = vadd.f32 %v2687_v54, %v2686_v0 }
 0x441   : > { %v2735_v20 = vadd.f32 %v2734_v7, %v2733_v12  ;;  %v2720_v11 = vadd.f32 %v2719_v46, %v2718_v44  ;;  %v2705_v31 = vadd.f32 %v2704_v37, %v2703_v47  ;;  %v2759_v7 = vmul.f32 %v4483_v19, %v4474_v61 }
 0x442   : > { %v2750_v34 = vsel %vm597_vm1, %v2749_v6, 0.0 }
 0x443   : > { %v2751_v17 = vrot.slane %v2750_v34, 4  ;;  %v2736_v39 = vrot.slane %v2735_v20, 2  ;;  %v2721_v56 = vrot.slane %v2720_v11, 1 }
 0x445   : > { %v2752_v52 = vadd.f32 %v2751_v17, %v2750_v34  ;;  %v2737_v2 = vadd.f32 %v2736_v39, %v2735_v20  ;;  %v2722_v6 = vadd.f32 %v2721_v56, %v2720_v11 }
 0x447   : > { %v2753_v48 = vrot.slane %v2752_v52, 2  ;;  %v2738_v42 = vrot.slane %v2737_v2, 1 }
 0x449   : > { %v2754_v8 = vadd.f32 %v2753_v48, %v2752_v52  ;;  %v2739_v29 = vadd.f32 %v2738_v42, %v2737_v2  ;;  %v2898_v2 = vpop.permute.xlu1 %2897 }
 0x44b   : > { %v2755_v32 = vrot.slane %v2754_v8, 1 }
 0x44d   : > { %v2756_v34 = vadd.f32 %v2755_v32, %v2754_v8 }
 0x490   : > { %v2624_v53 = vpop.permute.xlu0 %2623 }
 0x491   : > { %2626 = vst.msk [vmem:[#allocation2] sm:$0xff] %vm597_vm1, %v2624_v53 }
 0x494   : > { %v2534_v5 = vpop.permute.xlu0 %2533 }
 0x495   : > { %v2550_v57 = vmul.f32 %v2534_v5, %v4440_v62 }
 0x497   : > { %2558 = vst.msk [vmem:[#allocation4 + $0x38] sm:$0xff] %vm597_vm1, %v2550_v57 }
 0x498   : > { %v2629_v27 = vld [vmem:[#allocation2] sm:$0x1]  ;;  %v2644_v30 = vld [vmem:[#allocation2 + $0x1] sm:$0x1]  ;;  %v2661_v33 = vld [vmem:[#allocation2 + $0x2] sm:$0x1] }
 0x499   : > { %v2639_v38 = vadd.f32 %v2638_v58, %v2629_v27  ;;  %v2655_v41 = vadd.f32 %v2654_v26, %v2644_v30  ;;  %v2672_v45 = vadd.f32 %v2671_v25, %v2661_v33  ;;  %v2678_v35 = vld [vmem:[#allocation2 + $0x3] sm:$0x1]  ;;  %v2695_v1 = vld [vmem:[#allocation2 + $0x4] sm:$0x1]  ;;  %v2712_v12 = vld [vmem:[#allocation2 + $0x5] sm:$0x1] }
 0x49a   : > { %v2689_v62 = vadd.f32 %v2688_v36, %v2678_v35  ;;  %v2706_v23 = vadd.f32 %v2705_v31, %v2695_v1  ;;  %v2723_v49 = vadd.f32 %v2722_v6, %v2712_v12  ;;  %v2729_v50 = vld [vmem:[#allocation2 + $0x6] sm:$0x1]  ;;  %v2746_v63 = vld [vmem:[#allocation2 + $0x7] sm:$0x1] }
 0x49b   : > { %2640 = vst.msk [vmem:[#allocation2] sm:$0x1] %vm633_vm0, %v2639_v38  ;;  %2656 = vst.msk [vmem:[#allocation2 + $0x1] sm:$0x1] %vm633_vm0, %v2655_v41  ;;  %v2740_v55 = vadd.f32 %v2739_v29, %v2729_v50  ;;  %v2757_v4 = vadd.f32 %v2756_v34, %v2746_v63 }
 0x49c   : > { %2673 = vst.msk [vmem:[#allocation2 + $0x2] sm:$0x1] %vm633_vm0, %v2672_v45  ;;  %2690 = vst.msk [vmem:[#allocation2 + $0x3] sm:$0x1] %vm633_vm0, %v2689_v62 }
 0x49d   : > { %2707 = vst.msk [vmem:[#allocation2 + $0x4] sm:$0x1] %vm633_vm0, %v2706_v23  ;;  %2724 = vst.msk [vmem:[#allocation2 + $0x5] sm:$0x1] %vm633_vm0, %v2723_v49 }
 0x49e   : > { %2741 = vst.msk [vmem:[#allocation2 + $0x6] sm:$0x1] %vm633_vm0, %v2740_v55  ;;  %2758 = vst.msk [vmem:[#allocation2 + $0x7] sm:$0x1] %vm633_vm0, %v2757_v4  ;;  %v2761_v17 = vld [vmem:[#allocation4 + $0x38] sm:$0xff] }
 0x49f   : > { %v2762_v21 = vadd.f32 %v2761_v17, %v2759_v7 }
 0x4a1   : > { %2763 = vst.msk [vmem:[%s594_s23] sm:$0xff] %vm597_vm1, %v2762_v21  ;;  %s3781_s23 = smov [#allocation7]  }
 0x4a2   : > { %s3687_s22 = sshll.u32 %s3781_s23, 4  ;;  %s3688_s22 = int_to_ptr.vmem [resolvable:$false] %s3687_s22 }
 0x4a3   : > { %s3689_s4 = scalar_lea.vmem %s3688_s22, 32  ;;  %p3690_p0 = scmp.lt.s32.totalorder %s2999_s0, %s3688_s22 }
 0x4a4   : > { %p3691_p1 = scmp.lt.s32.totalorder %s3689_s4, %s3683_s3 }
 0x4a5   : > { %v2764_v14 = vld [vmem:[#allocation2] sm:$0xff] }
 0x4a6   : > { %v2769_v16 = vpack.c.bf16 %v2764_v14, %v2764_v14  ;;  %p3692_p2 = por %p3691_p1, %p3690_p0 }
 0x4a8   : > { %3597 = vmatmul.mubr.msk.bf16.vlgmr.msra.gmra.mxu1 %vm597_vm1, %v2769_v16  ;;  %p3693_p3 = pnand %p3692_p2, %p3686_p13 }
 0x4a9   : > { %3612 = vmatprep.mubr.msk.bf16.mxu1 %vm3776_vm2, %v3775_v9  ;;  %3609 = vmatpush3.bf16.msra.mxu1 %v3672_v3 }
 0x4aa   : > { %3610 = vmatprep.subr.bf16.mxu1 %v3775_v9  ;;  %v3156_v9 = vld [vmem:[%s4609_s11] ss:$0 sm:$0xff] }
 0x4ad   : > { %3611 = vmatpush3.bf16.msra.mxu1 %v3673_v10 }
 0x568   : > { %v2819_v60 = vpop.f32.mrf.mxu1 }
 0x569   : > { %v2825_v22 = vsub.f32 %v2764_v14, %v2819_v60 }
 0x56a   : > { %v3598_v44 = vpop.f32.mrf.mxu1 }
 0x56b   : > { %v2826_v20 = vmul.f32 %v2825_v22, %v2825_v22 }
 0x56c   : > { %v2822_v61 = vpop.f32.mrf.mxu1 }
 0x56d   : > { %v2827_v19 = vpack.c.bf16 %v2826_v20, %v2826_v20 }
 0x56e   : > { %v3599_v52 = vpop.f32.mrf.mxu1 }
 0x56f   : > { %3605 = vmatmul.mubr.msk.bf16.vlgmr.msra.gmra.mxu0 %vm597_vm1, %v2827_v19 }
 0x62f   : > { %v2865_v40 = vpop.f32.mrf.mxu0 }
 0x630   : > { %v2866_v15 = vadd.f32 0.00064, %v2865_v40 }
 0x631   : > { %v3606_v39 = vpop.f32.mrf.mxu0 }
 0x632   : > { %3680 = vrsqrt.f32 %v2866_v15 }
 0x633   : > { %v2868_v43 = vpop.f32.mrf.mxu0 }
 0x635   : > { %v3607_v46 = vpop.f32.mrf.mxu0 }
 0x63f   : > { %v3681_v48 = vpop.eup %3680 }
 0x640   : > { %v2872_v18 = vmul.f32 %v3681_v48, %v2825_v22 }
 0x642   : > { %v2880_v28 = vmul.f32 %v3155_v59, %v2872_v18 }
 0x644   : > { %v2888_v47 = vadd.f32 %v3156_v9, %v2880_v28 }
 0x646   : > { %v2900_v53 = vmul.f32 %v2898_v2, %v2888_v47 }
 0x648   : > { %v2901_v0 = vpack.c.bf16 %v2900_v53, %v2900_v53 }
 0x64a   : > { %3613 = vmatmul.mubr.msk.bf16.vlgmr.msra.gmra.mxu1 %vm597_vm1, %v2901_v0 }
 0x64b   : > { %3696 = shalt.err (!%p3693_p3)
}
 0x64c   : > { %s3697_s29 = scalar_lea.hbm %s2996_s18, 16  ;;  %s3701_s30 = scalar_lea.hbm %s4614_s16, 32 }
 0x64d   : > { %p3698_p4 = scmp.ne.s32.totalorder %s2996_s18, %s3697_s29  ;;  %p3702_p9 = scmp.lt.s32.totalorder %s2996_s18, %s4614_s16 }
 0x64e   : > { %p3703_p10 = scmp.lt.s32.totalorder %s3701_s30, %s3697_s29 }
 0x64f   : > { %p3699_p7 = pnand %p3698_p4, %p3911_p5 }
 0x650   : > { %p3704_p11 = por %p3703_p10, %p3702_p9 }
 0x651   : > { %p3700_p8 = pneg %p3699_p7 }
 0x653   : > { %p3705_p12 = pnand %p3704_p11, %p3700_p8 }
 0x655   : > { %3708 = shalt.err (!%p3705_p12)
}
 0x656   : > { %3617 = dma.vmem_to_hbm [thread:$0]  (%p3911_p5), %s2999_s0, 16, %s2996_s18, %s2969_s21   ;;  %v3682_v8 = vld [vmem:[%s3932_s20] sm:$0xff] }
 0x657   : > { %s3137_s3 = sshll.u32 %s3962_s26, 3  ;;  %s3162_s4 = sshll.u32 %s3894_s28, 7 }
 0x658   : > { %s567_s23 = scalar_lea.vmem [#allocation5], %s3137_s3  ;;  %s4555_s29 = scalar_lea.hbm %s4613_s15, %s3162_s4 }
 0x659   : > { %s2985_s22 = sshll.u32 %s567_s23, 4  ;;  %s2964_s28 = scalar_lea.sflag [#allocation6], %s3962_s26  ;;  %s4557_s22 = int_to_ptr.vmem [resolvable:$true] %s2985_s22 }
 0x65a   : > { %s3709_s0 = scalar_lea.vmem %s4557_s22, 128  ;;  %s3782_s20 = smov [#allocation5]  }
 0x65b   : > { %p3710_p13 = scmp.ne.s32.totalorder %s4557_s22, %s3709_s0  ;;  %s3713_s18 = sshll.u32 %s3782_s20, 4  ;;  %s3714_s18 = int_to_ptr.vmem [resolvable:$false] %s3713_s18 }
 0x65c   : > { %s3715_s21 = scalar_lea.vmem %s3714_s18, 256  ;;  %p3716_p2 = scmp.lt.s32.totalorder %s4557_s22, %s3714_s18 }
 0x65d   : > { %p3711_p0 = pnand %p3710_p13, %p3911_p5  ;;  %p3717_p3 = scmp.lt.s32.totalorder %s3715_s21, %s3709_s0 }
 0x65f   : > { %p3712_p1 = pneg %p3711_p0  ;;  %p3718_p4 = por %p3717_p3, %p3716_p2 }
 0x661   : > { %p3719_p7 = pnand %p3718_p4, %p3712_p1 }
 0x70a   : > { %v2955_v11 = vpop.f32.mrf.mxu1 }
 0x70b   : > { %v2961_v13 = vadd.f32 %v3682_v8, %v2955_v11 }
 0x70c   : > { %v3614_v24 = vpop.f32.mrf.mxu1 }
 0x70d   : > { %2962 = vst.msk [vmem:[%s567_s23] sm:$0xff] %vm597_vm1, %v2961_v13 }
 0x70e   : > { %v2958_v51 = vpop.f32.mrf.mxu1 }
 0x70f   : > { %3722 = shalt.err (!%p3719_p7)
}
 0x710   : > { %s3723_s2 = scalar_lea.hbm %s4555_s29, 128  ;;  %s3727_s30 = scalar_lea.hbm %s4613_s15, 256 }
 0x711   : > { %p3724_p8 = scmp.ne.s32.totalorder %s4555_s29, %s3723_s2  ;;  %p3728_p11 = scmp.lt.s32.totalorder %s4555_s29, %s4613_s15 }
 0x712   : > { %p3729_p12 = scmp.lt.s32.totalorder %s3727_s30, %s3723_s2 }
 0x713   : > { %p3725_p9 = pnand %p3724_p8, %p3911_p5 }
 0x714   : > { %p3730_p13 = por %p3729_p12, %p3728_p11 }
 0x715   : > { %p3726_p10 = pneg %p3725_p9 }
 0x717   : > { %p3731_p0 = pnand %p3730_p13, %p3726_p10 }
 0x719   : > { %3734 = shalt.err (!%p3731_p0)
}
 0x71a   : > { %3616 = dma.vmem_to_hbm [thread:$0]  (%p3911_p5), %s4557_s22, 128, %s4555_s29, %s2964_s28   ;;  %v3615_v54 = vpop.f32.mrf.mxu1 }
 0x71b PF: > { %p3627_p1 = scmp.ge.s32.totalorder %s3773_s27, 2  ;;  %s3013_s5 = sand.u32 1, %s3761_s24  }
 0x71c   : > { %s3014_s6 = scalar_lea.sflag [#allocation6], %s3013_s5 }
 0x71d   : > { %p3621_p2 = pnand %p3627_p1, %p3915_p6 }
 0x71f   : > { %p3622_p3 = pneg %p3621_p2 }
 0x721   : > { %3752 = dma.done.wait (%p3622_p3), %s3014_s6, 128  }
 0x722   : > { %3754 = vsyncadd (%p3622_p3), %s3014_s6, 4294967168  ;;  %s3023_s0 = scalar_lea.sflag [#allocation8], %s3013_s5 }
 0x723   : > { %3756 = dma.done.wait (%p3622_p3), %s3023_s0, 16  }
 0x724   : > { %3758 = vsyncadd (%p3622_p3), %s3023_s0, 4294967280  ;;  %s4641_s27 = sld [smem:[#allocation12_spill]]  ;;  %s4644_s24 = smov %s3765_s25 }
 0x725   : > { %s4642_s1 = sld [smem:[#allocation11_spill]] }
 0x726   : > { %s4643_s26 = sld [smem:[#allocation13_spill]] }
 0x72a   : > { %p31_p5 = scmp.ge.s32.totalorder %s4641_s27, 4  }
 0x72b   : > { %s4645_s25 = smov %s4642_s1 }
 0x72c   :  { %33 = sbr.rel (!%p31_p5) target bundleno = 13 (0xd), region = 164 }
 0x731   :  { %3034 = vsyncpa [#allocation6], 1 }
 0x732   :  { %3036 = vsyncpa [#allocation6 + $0x1], 1 }
 0x733   :  { %3037 = vsyncpa [#allocation8], 1 }
 0x734   :  { %3039 = vsyncpa [#allocation8 + $0x1], 1 }

</bundles_post_ra>
